<compile_context>
chip_gen: v5e
topology: v5e:2x2
jax: 0.10.0
libtpu: 0.0.40
codegen_flags: <defaults>
</compile_context>

<pallas_src>
import functools

import jax
import jax.numpy as jnp
from jax import lax
from jax.experimental import pallas as pl
from jax.experimental.pallas import tpu as pltpu


def _round_up(x, m):
    return ((x + m - 1) // m) * m


# ------------------------------ Pallas kernel ------------------------------- #
def _fused_ae_kernel(x_ref, w_ref, b_ref, mask_ref, o_ref, buf_ref, *,
                     guard, gp, offsets, acts):
    """Runs all 4 layers for one image.

    x_ref   : (1, gp, C)   bf16   flattened halo-padded input grid (halo = 0)
    w_ref   : (4, 4, C, C) bf16   folded per-layer / per-tap weight matrices
    b_ref   : (4, 1, C)    f32    per-layer biases (padded with zeros)
    mask_ref: (gp, 1)      f32    1 on the valid grid, 0 on the halo ring
    o_ref   : (1, gp, C)   f32    last layer output on the padded grid
    buf_ref : (R, C)       bf16   VMEM working buffer (guard rows on both ends)
    """
    r_rows, c_pad = buf_ref.shape

    # Zero guards + halo, then drop this image's padded grid into the buffer.
    buf_ref[...] = jnp.zeros((r_rows, c_pad), jnp.bfloat16)
    buf_ref[guard:guard + gp, :] = x_ref[0]
    mask = mask_ref[...]                                     # (gp, 1) f32

    for l in range(4):
        acc = jnp.zeros((gp, c_pad), jnp.float32)
        for t in range(4):
            off = offsets[l][t]                              # static python int
            src = buf_ref[guard + off:guard + off + gp, :]   # (gp, C) bf16
            acc = acc + jnp.dot(src, w_ref[l, t],
                                preferred_element_type=jnp.float32)
        acc = acc + b_ref[l]
        if acts[l] == "relu":
            acc = jnp.maximum(acc, 0.0)
        else:  # sigmoid
            acc = 1.0 / (1.0 + jnp.exp(-acc))
        acc = acc * mask                                     # zero the halo ring
        if l < 3:
            buf_ref[guard:guard + gp, :] = acc.astype(jnp.bfloat16)
        else:
            o_ref[0] = acc


# --------------------------- weight / input folding ------------------------- #
def _fold_params(params, c_pad):
    """Folds the 3x3 stride-2 (transposed) conv weights into 2x2-tap matrices
    on the space-to-depth(4) representation."""
    w1, b1 = params["enc1_w"], params["enc1_b"]   # (C1, Cin, 3, 3)  Conv2d
    w2, b2 = params["enc2_w"], params["enc2_b"]   # (C2, C1, 3, 3)   Conv2d
    w3, b3 = params["dec1_w"], params["dec1_b"]   # (C2, C1, 3, 3)   ConvT (in,out,kh,kw)
    w4, b4 = params["dec2_w"], params["dec2_b"]   # (C1, Cout, 3, 3) ConvT
    C1, Cin = w1.shape[0], w1.shape[1]
    C2 = w2.shape[0]
    Cout = w4.shape[1]

    # (out_sub, tap, in_sub, kernel_tap) combos along one spatial axis.
    enc1_combos = []
    for r in (0, 1):
        for ki in (0, 1, 2):
            u = 2 * r + ki - 1
            dy = -1 if u < 0 else 0
            enc1_combos.append((r, dy + 1, u - 4 * dy, ki))
    enc2_combos = []
    for ki in (0, 1, 2):
        u = ki - 1
        dy = -1 if u < 0 else 0
        enc2_combos.append((0, dy + 1, u - 2 * dy, ki))
    dec1_combos = [(0, 0, 0, 1), (1, 1, 0, 0), (1, 0, 0, 2)]
    dec2_combos = [(0, 0, 0, 1), (1, 0, 1, 0), (1, 0, 0, 2),
                   (2, 0, 1, 1), (3, 1, 0, 0), (3, 0, 1, 2)]

    def fold(get_tap, combos, in_subs, out_subs, cin, cout):
        wf = jnp.zeros((2, 2, in_subs * in_subs * cin,
                        out_subs * out_subs * cout), jnp.float32)
        for (ro, di, ri, ki) in combos:            # rows
            for (so, dj, si, kj) in combos:        # columns (symmetric)
                blk = get_tap(ki, kj)              # (cin, cout)
                i0 = (ri * in_subs + si) * cin
                o0 = (ro * out_subs + so) * cout
                wf = wf.at[di, dj, i0:i0 + cin, o0:o0 + cout].add(blk)
        return wf

    folds = [
        fold(lambda ki, kj: w1[:, :, ki, kj].T, enc1_combos, 4, 2, Cin, C1),
        fold(lambda ki, kj: w2[:, :, ki, kj].T, enc2_combos, 2, 1, C1, C2),
        fold(lambda ki, kj: w3[:, :, ki, kj],   dec1_combos, 1, 2, C2, C1),
        fold(lambda ki, kj: w4[:, :, ki, kj],   dec2_combos, 2, 4, C1, Cout),
    ]
    w_all = jnp.stack([
        jnp.pad(f, ((0, 0), (0, 0),
                    (0, c_pad - f.shape[2]), (0, c_pad - f.shape[3])))
        .reshape(4, c_pad, c_pad)
        for f in folds
    ]).astype(jnp.bfloat16)                              # (4, 4, C, C)

    biases = [jnp.tile(b1, 4), b2, jnp.tile(b3, 4), jnp.tile(b4, 16)]
    b_all = jnp.stack([jnp.pad(b, (0, c_pad - b.shape[0])) for b in biases])
    return w_all, b_all.reshape(4, 1, c_pad).astype(jnp.float32)


def _prepare_input(x_nchw, c_pad):
    """NCHW -> space-to-depth(4) -> halo-pad(1) -> flatten -> bf16."""
    x = jnp.transpose(x_nchw, (0, 2, 3, 1))
    N, H, W, Cin = x.shape
    Ha, Wa = H // 4, W // 4
    x4 = (x.reshape(N, Ha, 4, Wa, 4, Cin)
            .transpose(0, 1, 3, 2, 4, 5)
            .reshape(N, Ha, Wa, 16 * Cin))
    x4 = jnp.pad(x4, ((0, 0), (1, 1), (1, 1), (0, c_pad - 16 * Cin)))
    return x4.reshape(N, (Ha + 2) * (Wa + 2), c_pad).astype(jnp.bfloat16)


def _postprocess(y_flat, N, H, W, Cout):
    """Flattened padded grid -> crop halo -> depth-to-space(4) -> NCHW."""
    Ha, Wa = H // 4, W // 4
    Hg, Wg = Ha + 2, Wa + 2
    y = y_flat.reshape(N, Hg, Wg, -1)[:, 1:Hg - 1, 1:Wg - 1, :16 * Cout]
    y = (y.reshape(N, Ha, Wa, 4, 4, Cout)
           .transpose(0, 1, 3, 2, 4, 5)
           .reshape(N, H, W, Cout))
    return jnp.transpose(y, (0, 3, 1, 2))


def _make_mask(Hg, Wg):
    m = jnp.zeros((Hg, Wg), jnp.float32).at[1:Hg - 1, 1:Wg - 1].set(1.0)
    return m.reshape(Hg * Wg, 1)


# --------------------------------- forward ---------------------------------- #
def autoencoder_forward(x_nchw, params):
    N, Cin, H, W = x_nchw.shape
    assert H % 4 == 0 and W % 4 == 0, "spatial dims must be multiples of 4"
    C1 = params["enc1_w"].shape[0]
    C2 = params["enc2_w"].shape[0]
    Cout = params["dec2_w"].shape[1]

    c_pad = _round_up(max(16 * Cin, 4 * C1, C2, 16 * Cout), 128)
    Hg, Wg = H // 4 + 2, W // 4 + 2
    gp = Hg * Wg
    guard = _round_up(Wg + 1, 16)          # >= max |tap offset|, bf16-tile aligned
    r_rows = gp + 2 * guard

    w_all, b_all = _fold_params(params, c_pad)
    mask = _make_mask(Hg, Wg)
    xf = _prepare_input(x_nchw, c_pad)

    enc_offs = tuple((di - 1) * Wg + (dj - 1) for di in (0, 1) for dj in (0, 1))
    dec_offs = tuple(di * Wg + dj for di in (0, 1) for dj in (0, 1))
    offsets = (enc_offs, enc_offs, dec_offs, dec_offs)
    acts = ("relu", "relu", "relu", "sigmoid")

    kernel = functools.partial(_fused_ae_kernel, guard=guard, gp=gp,
                               offsets=offsets, acts=acts)
    y_flat = pl.pallas_call(
        kernel,
        out_shape=jax.ShapeDtypeStruct((N, gp, c_pad), jnp.float32),
        grid_spec=pltpu.PrefetchScalarGridSpec(
            num_scalar_prefetch=0,
            grid=(N,),
            in_specs=[
                pl.BlockSpec((1, gp, c_pad), lambda n: (n, 0, 0)),       # input grid
                pl.BlockSpec((4, 4, c_pad, c_pad), lambda n: (0, 0, 0, 0)),  # weights
                pl.BlockSpec((4, 1, c_pad), lambda n: (0, 0, 0)),        # biases
                pl.BlockSpec((gp, 1), lambda n: (0, 0)),                 # halo mask
            ],
            out_specs=pl.BlockSpec((1, gp, c_pad), lambda n: (n, 0, 0)),
            scratch_shapes=[pltpu.VMEM((r_rows, c_pad), jnp.bfloat16)],
        ),
        compiler_params=pltpu.CompilerParams(dimension_semantics=("parallel",)),
    )(xf, w_all, b_all, mask)

    return _postprocess(y_flat, N, H, W, Cout)


# ------------------------------ pure-JAX reference --------------------------- #
def _q(t):  # mirror the kernel's bf16 MXU operands
    return t.astype(jnp.bfloat16).astype(jnp.float32)


def reference_forward(x_nchw, params):
    sigmoid = lambda t: 1.0 / (1.0 + jnp.exp(-t))
    x = _q(jnp.transpose(x_nchw, (0, 2, 3, 1)))

    def conv(h, w, b, stride):
        wh = jnp.transpose(_q(w), (2, 3, 1, 0))                    # HWIO
        y = lax.conv_general_dilated(h, wh, (stride, stride), ((1, 1), (1, 1)),
                                     dimension_numbers=("NHWC", "HWIO", "NHWC"),
                                     precision=lax.Precision.HIGHEST)
        return y + b

    def convT(h, wt, b):
        wh = jnp.transpose(jnp.flip(_q(wt), (2, 3)), (2, 3, 0, 1))  # HWIO
        y = lax.conv_general_dilated(h, wh, (1, 1), ((1, 2), (1, 2)),
                                     lhs_dilation=(2, 2),
                                     dimension_numbers=("NHWC", "HWIO", "NHWC"),
                                     precision=lax.Precision.HIGHEST)
        return y + b

    h = _q(jnp.maximum(conv(x, params["enc1_w"], params["enc1_b"], 2), 0.0))
    h = _q(jnp.maximum(conv(h, params["enc2_w"], params["enc2_b"], 2), 0.0))
    h = _q(jnp.maximum(convT(h, params["dec1_w"], params["dec1_b"]), 0.0))
    h = sigmoid(convT(h, params["dec2_w"], params["dec2_b"]))
    return jnp.transpose(h, (0, 3, 1, 2))


# -------------------------------- parameters -------------------------------- #
def init_params(key, n_channels=3, hidden_size=32):
    h4 = hidden_size // 4
    ks = jax.random.split(key, 4)

    def w_init(k, shape, fan_in):
        return (jax.random.normal(k, shape, jnp.float32) / jnp.sqrt(fan_in))

    return {
        "enc1_w": w_init(ks[0], (h4, n_channels, 3, 3), n_channels * 9),
        "enc1_b": jnp.zeros((h4,), jnp.float32),
        "enc2_w": w_init(ks[1], (hidden_size, h4, 3, 3), h4 * 9),
        "enc2_b": jnp.zeros((hidden_size,), jnp.float32),
        # ConvTranspose2d weight layout: (Cin, Cout, kh, kw)
        "dec1_w": w_init(ks[2], (hidden_size, h4, 3, 3), hidden_size * 9),
        "dec1_b": jnp.zeros((h4,), jnp.float32),
        "dec2_w": w_init(ks[3], (h4, n_channels, 3, 3), h4 * 9),
        "dec2_b": jnp.zeros((n_channels,), jnp.float32),
    }


if __name__ == "__main__":
    key = jax.random.PRNGKey(0)
    k_x, k_p = jax.random.split(key)

    batch, n_channels, spatial, hidden = 2, 3, 16, 32
    x = jax.random.normal(k_x, (batch, n_channels, spatial, spatial), jnp.float32)
    params = init_params(k_p, n_channels=n_channels, hidden_size=hidden)

    out = jax.block_until_ready(jax.jit(autoencoder_forward)(x, params))
    ref = jax.block_until_ready(jax.jit(reference_forward)(x, params))

    assert out.shape == (batch, n_channels, spatial, spatial), out.shape
    assert out.dtype == jnp.float32
    max_err = float(jnp.max(jnp.abs(out - ref)))
    assert max_err < 3e-2, f"mismatch vs reference: {max_err}"
    print("KERNEL_OK")
</pallas_src>

<mosaic_0001>
module attributes {stable_mosaic.version = 11 : i64} {
  func.func @_fused_ae_kernel(%arg0: i32, %arg1: memref<1x36x128xbf16, #tpu.memory_space<vmem>>, %arg2: memref<4x4x128x128xbf16, #tpu.memory_space<vmem>>, %arg3: memref<4x1x128xf32, #tpu.memory_space<vmem>>, %arg4: memref<36x1xf32, #tpu.memory_space<vmem>>, %arg5: memref<1x36x128xf32, #tpu.memory_space<vmem>>, %arg6: memref<68x128xbf16, #tpu.memory_space<vmem>>) attributes {dimension_semantics = [#tpu.dimension_semantics<parallel>], iteration_bounds = array<i64: 2>, scalar_prefetch = 0 : i64, scratch_operands = 1 : i64, tpu.core_type = #tpu.core_type<tc>, window_params = [{transform_indices = @transform_0, window_bounds = array<i64: 1, 36, 128>}, {pipeline_mode = #tpu.pipeline_mode<synchronous>, transform_indices = @transform_1, window_bounds = array<i64: 4, 4, 128, 128>}, {pipeline_mode = #tpu.pipeline_mode<synchronous>, transform_indices = @transform_2, window_bounds = array<i64: 4, 1, 128>}, {pipeline_mode = #tpu.pipeline_mode<synchronous>, transform_indices = @transform_3, window_bounds = array<i64: 36, 1>}, {transform_indices = @transform_4, window_bounds = array<i64: 1, 36, 128>}]} {
    %cst = arith.constant 0.000000e+00 : bf16
    %0 = vector.broadcast %cst : bf16 to vector<68x128xbf16>
    %c0 = arith.constant 0 : index
    %c0_0 = arith.constant 0 : index
    %1 = vector.load %arg6[%c0, %c0_0] : memref<68x128xbf16, #tpu.memory_space<vmem>>, vector<68x128xbf16>
    tpu.vector_store %arg6[%c0, %c0_0], %0 {strides = array<i32>} : memref<68x128xbf16, #tpu.memory_space<vmem>>, vector<68x128xbf16>,
    %c0_1 = arith.constant 0 : index
    %c0_2 = arith.constant 0 : index
    %c0_3 = arith.constant 0 : index
    %2 = vector.load %arg1[%c0_1, %c0_2, %c0_3] : memref<1x36x128xbf16, #tpu.memory_space<vmem>>, vector<1x36x128xbf16>
    %3 = vector.shape_cast %2 : vector<1x36x128xbf16> to vector<36x128xbf16>
    %c16 = arith.constant 16 : index
    %c0_4 = arith.constant 0 : index
    %4 = vector.load %arg6[%c16, %c0_4] : memref<68x128xbf16, #tpu.memory_space<vmem>>, vector<36x128xbf16>
    tpu.vector_store %arg6[%c16, %c0_4], %3 {strides = array<i32>} : memref<68x128xbf16, #tpu.memory_space<vmem>>, vector<36x128xbf16>,
    %c0_5 = arith.constant 0 : index
    %c0_6 = arith.constant 0 : index
    %5 = vector.load %arg4[%c0_5, %c0_6] : memref<36x1xf32, #tpu.memory_space<vmem>>, vector<36x1xf32>
    %cst_7 = arith.constant 0.000000e+00 : f32
    %6 = vector.broadcast %cst_7 : f32 to vector<36x128xf32>
    %c9 = arith.constant 9 : index
    %c0_8 = arith.constant 0 : index
    %7 = vector.load %arg6[%c9, %c0_8] : memref<68x128xbf16, #tpu.memory_space<vmem>>, vector<36x128xbf16>
    %c0_9 = arith.constant 0 : index
    %c0_10 = arith.constant 0 : index
    %c0_11 = arith.constant 0 : index
    %c0_12 = arith.constant 0 : index
    %8 = vector.load %arg2[%c0_9, %c0_10, %c0_11, %c0_12] : memref<4x4x128x128xbf16, #tpu.memory_space<vmem>>, vector<1x1x128x128xbf16>
    %9 = vector.shape_cast %8 : vector<1x1x128x128xbf16> to vector<128x128xbf16>
    %cst_13 = arith.constant dense<0.000000e+00> : vector<36x128xf32>
    %10 = tpu.matmul %7, %9, %cst_13 {dimension_numbers = #tpu.dot_dimension_numbers<[1], [0], [0], [1], [0, 0, 1, 1], [], []>} : vector<36x128xbf16>, vector<128x128xbf16>, vector<36x128xf32> -> vector<36x128xf32>
    %11 = arith.addf %6, %10 : vector<36x128xf32>
    %c10 = arith.constant 10 : index
    %c0_14 = arith.constant 0 : index
    %12 = vector.load %arg6[%c10, %c0_14] : memref<68x128xbf16, #tpu.memory_space<vmem>>, vector<36x128xbf16>
    %c0_15 = arith.constant 0 : index
    %c1 = arith.constant 1 : index
    %c0_16 = arith.constant 0 : index
    %c0_17 = arith.constant 0 : index
    %13 = vector.load %arg2[%c0_15, %c1, %c0_16, %c0_17] : memref<4x4x128x128xbf16, #tpu.memory_space<vmem>>, vector<1x1x128x128xbf16>
    %14 = vector.shape_cast %13 : vector<1x1x128x128xbf16> to vector<128x128xbf16>
    %cst_18 = arith.constant dense<0.000000e+00> : vector<36x128xf32>
    %15 = tpu.matmul %12, %14, %cst_18 {dimension_numbers = #tpu.dot_dimension_numbers<[1], [0], [0], [1], [0, 0, 1, 1], [], []>} : vector<36x128xbf16>, vector<128x128xbf16>, vector<36x128xf32> -> vector<36x128xf32>
    %16 = arith.addf %11, %15 : vector<36x128xf32>
    %c15 = arith.constant 15 : index
    %c0_19 = arith.constant 0 : index
    %17 = vector.load %arg6[%c15, %c0_19] : memref<68x128xbf16, #tpu.memory_space<vmem>>, vector<36x128xbf16>
    %c0_20 = arith.constant 0 : index
    %c2 = arith.constant 2 : index
    %c0_21 = arith.constant 0 : index
    %c0_22 = arith.constant 0 : index
    %18 = vector.load %arg2[%c0_20, %c2, %c0_21, %c0_22] : memref<4x4x128x128xbf16, #tpu.memory_space<vmem>>, vector<1x1x128x128xbf16>
    %19 = vector.shape_cast %18 : vector<1x1x128x128xbf16> to vector<128x128xbf16>
    %cst_23 = arith.constant dense<0.000000e+00> : vector<36x128xf32>
    %20 = tpu.matmul %17, %19, %cst_23 {dimension_numbers = #tpu.dot_dimension_numbers<[1], [0], [0], [1], [0, 0, 1, 1], [], []>} : vector<36x128xbf16>, vector<128x128xbf16>, vector<36x128xf32> -> vector<36x128xf32>
    %21 = arith.addf %16, %20 : vector<36x128xf32>
    %c16_24 = arith.constant 16 : index
    %c0_25 = arith.constant 0 : index
    %22 = vector.load %arg6[%c16_24, %c0_25] : memref<68x128xbf16, #tpu.memory_space<vmem>>, vector<36x128xbf16>
    %c0_26 = arith.constant 0 : index
    %c3 = arith.constant 3 : index
    %c0_27 = arith.constant 0 : index
    %c0_28 = arith.constant 0 : index
    %23 = vector.load %arg2[%c0_26, %c3, %c0_27, %c0_28] : memref<4x4x128x128xbf16, #tpu.memory_space<vmem>>, vector<1x1x128x128xbf16>
    %24 = vector.shape_cast %23 : vector<1x1x128x128xbf16> to vector<128x128xbf16>
    %cst_29 = arith.constant dense<0.000000e+00> : vector<36x128xf32>
    %25 = tpu.matmul %22, %24, %cst_29 {dimension_numbers = #tpu.dot_dimension_numbers<[1], [0], [0], [1], [0, 0, 1, 1], [], []>} : vector<36x128xbf16>, vector<128x128xbf16>, vector<36x128xf32> -> vector<36x128xf32>
    %26 = arith.addf %21, %25 : vector<36x128xf32>
    %c0_30 = arith.constant 0 : index
    %c0_31 = arith.constant 0 : index
    %c0_32 = arith.constant 0 : index
    %27 = vector.load %arg3[%c0_30, %c0_31, %c0_32] : memref<4x1x128xf32, #tpu.memory_space<vmem>>, vector<1x1x128xf32>
    %28 = vector.shape_cast %27 : vector<1x1x128xf32> to vector<1x128xf32>
    %29 = vector.broadcast %28 : vector<1x128xf32> to vector<36x128xf32>
    %30 = arith.addf %26, %29 : vector<36x128xf32>
    %cst_33 = arith.constant 0.000000e+00 : f32
    %31 = vector.broadcast %cst_33 : f32 to vector<36x128xf32>
    %32 = arith.maximumf %30, %31 : vector<36x128xf32>
    %33 = vector.broadcast %5 : vector<36x1xf32> to vector<36x128xf32>
    %34 = arith.mulf %32, %33 : vector<36x128xf32>
    %35 = arith.truncf %34 : vector<36x128xf32> to vector<36x128xbf16>
    %c16_34 = arith.constant 16 : index
    %c0_35 = arith.constant 0 : index
    %36 = vector.load %arg6[%c16_34, %c0_35] : memref<68x128xbf16, #tpu.memory_space<vmem>>, vector<36x128xbf16>
    tpu.vector_store %arg6[%c16_34, %c0_35], %35 {strides = array<i32>} : memref<68x128xbf16, #tpu.memory_space<vmem>>, vector<36x128xbf16>,
    %cst_36 = arith.constant 0.000000e+00 : f32
    %37 = vector.broadcast %cst_36 : f32 to vector<36x128xf32>
    %c9_37 = arith.constant 9 : index
    %c0_38 = arith.constant 0 : index
    %38 = vector.load %arg6[%c9_37, %c0_38] : memref<68x128xbf16, #tpu.memory_space<vmem>>, vector<36x128xbf16>
    %c1_39 = arith.constant 1 : index
    %c0_40 = arith.constant 0 : index
    %c0_41 = arith.constant 0 : index
    %c0_42 = arith.constant 0 : index
    %39 = vector.load %arg2[%c1_39, %c0_40, %c0_41, %c0_42] : memref<4x4x128x128xbf16, #tpu.memory_space<vmem>>, vector<1x1x128x128xbf16>
    %40 = vector.shape_cast %39 : vector<1x1x128x128xbf16> to vector<128x128xbf16>
    %cst_43 = arith.constant dense<0.000000e+00> : vector<36x128xf32>
    %41 = tpu.matmul %38, %40, %cst_43 {dimension_numbers = #tpu.dot_dimension_numbers<[1], [0], [0], [1], [0, 0, 1, 1], [], []>} : vector<36x128xbf16>, vector<128x128xbf16>, vector<36x128xf32> -> vector<36x128xf32>
    %42 = arith.addf %37, %41 : vector<36x128xf32>
    %c10_44 = arith.constant 10 : index
    %c0_45 = arith.constant 0 : index
    %43 = vector.load %arg6[%c10_44, %c0_45] : memref<68x128xbf16, #tpu.memory_space<vmem>>, vector<36x128xbf16>
    %c1_46 = arith.constant 1 : index
    %c1_47 = arith.constant 1 : index
    %c0_48 = arith.constant 0 : index
    %c0_49 = arith.constant 0 : index
    %44 = vector.load %arg2[%c1_46, %c1_47, %c0_48, %c0_49] : memref<4x4x128x128xbf16, #tpu.memory_space<vmem>>, vector<1x1x128x128xbf16>
    %45 = vector.shape_cast %44 : vector<1x1x128x128xbf16> to vector<128x128xbf16>
    %cst_50 = arith.constant dense<0.000000e+00> : vector<36x128xf32>
    %46 = tpu.matmul %43, %45, %cst_50 {dimension_numbers = #tpu.dot_dimension_numbers<[1], [0], [0], [1], [0, 0, 1, 1], [], []>} : vector<36x128xbf16>, vector<128x128xbf16>, vector<36x128xf32> -> vector<36x128xf32>
    %47 = arith.addf %42, %46 : vector<36x128xf32>
    %c15_51 = arith.constant 15 : index
    %c0_52 = arith.constant 0 : index
    %48 = vector.load %arg6[%c15_51, %c0_52] : memref<68x128xbf16, #tpu.memory_space<vmem>>, vector<36x128xbf16>
    %c1_53 = arith.constant 1 : index
    %c2_54 = arith.constant 2 : index
    %c0_55 = arith.constant 0 : index
    %c0_56 = arith.constant 0 : index
    %49 = vector.load %arg2[%c1_53, %c2_54, %c0_55, %c0_56] : memref<4x4x128x128xbf16, #tpu.memory_space<vmem>>, vector<1x1x128x128xbf16>
    %50 = vector.shape_cast %49 : vector<1x1x128x128xbf16> to vector<128x128xbf16>
    %cst_57 = arith.constant dense<0.000000e+00> : vector<36x128xf32>
    %51 = tpu.matmul %48, %50, %cst_57 {dimension_numbers = #tpu.dot_dimension_numbers<[1], [0], [0], [1], [0, 0, 1, 1], [], []>} : vector<36x128xbf16>, vector<128x128xbf16>, vector<36x128xf32> -> vector<36x128xf32>
    %52 = arith.addf %47, %51 : vector<36x128xf32>
    %c16_58 = arith.constant 16 : index
    %c0_59 = arith.constant 0 : index
    %53 = vector.load %arg6[%c16_58, %c0_59] : memref<68x128xbf16, #tpu.memory_space<vmem>>, vector<36x128xbf16>
    %c1_60 = arith.constant 1 : index
    %c3_61 = arith.constant 3 : index
    %c0_62 = arith.constant 0 : index
    %c0_63 = arith.constant 0 : index
    %54 = vector.load %arg2[%c1_60, %c3_61, %c0_62, %c0_63] : memref<4x4x128x128xbf16, #tpu.memory_space<vmem>>, vector<1x1x128x128xbf16>
    %55 = vector.shape_cast %54 : vector<1x1x128x128xbf16> to vector<128x128xbf16>
    %cst_64 = arith.constant dense<0.000000e+00> : vector<36x128xf32>
    %56 = tpu.matmul %53, %55, %cst_64 {dimension_numbers = #tpu.dot_dimension_numbers<[1], [0], [0], [1], [0, 0, 1, 1], [], []>} : vector<36x128xbf16>, vector<128x128xbf16>, vector<36x128xf32> -> vector<36x128xf32>
    %57 = arith.addf %52, %56 : vector<36x128xf32>
    %c1_65 = arith.constant 1 : index
    %c0_66 = arith.constant 0 : index
    %c0_67 = arith.constant 0 : index
    %58 = vector.load %arg3[%c1_65, %c0_66, %c0_67] : memref<4x1x128xf32, #tpu.memory_space<vmem>>, vector<1x1x128xf32>
    %59 = vector.shape_cast %58 : vector<1x1x128xf32> to vector<1x128xf32>
    %60 = vector.broadcast %59 : vector<1x128xf32> to vector<36x128xf32>
    %61 = arith.addf %57, %60 : vector<36x128xf32>
    %cst_68 = arith.constant 0.000000e+00 : f32
    %62 = vector.broadcast %cst_68 : f32 to vector<36x128xf32>
    %63 = arith.maximumf %61, %62 : vector<36x128xf32>
    %64 = vector.broadcast %5 : vector<36x1xf32> to vector<36x128xf32>
    %65 = arith.mulf %63, %64 : vector<36x128xf32>
    %66 = arith.truncf %65 : vector<36x128xf32> to vector<36x128xbf16>
    %c16_69 = arith.constant 16 : index
    %c0_70 = arith.constant 0 : index
    %67 = vector.load %arg6[%c16_69, %c0_70] : memref<68x128xbf16, #tpu.memory_space<vmem>>, vector<36x128xbf16>
    tpu.vector_store %arg6[%c16_69, %c0_70], %66 {strides = array<i32>} : memref<68x128xbf16, #tpu.memory_space<vmem>>, vector<36x128xbf16>,
    %cst_71 = arith.constant 0.000000e+00 : f32
    %68 = vector.broadcast %cst_71 : f32 to vector<36x128xf32>
    %c16_72 = arith.constant 16 : index
    %c0_73 = arith.constant 0 : index
    %69 = vector.load %arg6[%c16_72, %c0_73] : memref<68x128xbf16, #tpu.memory_space<vmem>>, vector<36x128xbf16>
    %c2_74 = arith.constant 2 : index
    %c0_75 = arith.constant 0 : index
    %c0_76 = arith.constant 0 : index
    %c0_77 = arith.constant 0 : index
    %70 = vector.load %arg2[%c2_74, %c0_75, %c0_76, %c0_77] : memref<4x4x128x128xbf16, #tpu.memory_space<vmem>>, vector<1x1x128x128xbf16>
    %71 = vector.shape_cast %70 : vector<1x1x128x128xbf16> to vector<128x128xbf16>
    %cst_78 = arith.constant dense<0.000000e+00> : vector<36x128xf32>
    %72 = tpu.matmul %69, %71, %cst_78 {dimension_numbers = #tpu.dot_dimension_numbers<[1], [0], [0], [1], [0, 0, 1, 1], [], []>} : vector<36x128xbf16>, vector<128x128xbf16>, vector<36x128xf32> -> vector<36x128xf32>
    %73 = arith.addf %68, %72 : vector<36x128xf32>
    %c17 = arith.constant 17 : index
    %c0_79 = arith.constant 0 : index
    %74 = vector.load %arg6[%c17, %c0_79] : memref<68x128xbf16, #tpu.memory_space<vmem>>, vector<36x128xbf16>
    %c2_80 = arith.constant 2 : index
    %c1_81 = arith.constant 1 : index
    %c0_82 = arith.constant 0 : index
    %c0_83 = arith.constant 0 : index
    %75 = vector.load %arg2[%c2_80, %c1_81, %c0_82, %c0_83] : memref<4x4x128x128xbf16, #tpu.memory_space<vmem>>, vector<1x1x128x128xbf16>
    %76 = vector.shape_cast %75 : vector<1x1x128x128xbf16> to vector<128x128xbf16>
    %cst_84 = arith.constant dense<0.000000e+00> : vector<36x128xf32>
    %77 = tpu.matmul %74, %76, %cst_84 {dimension_numbers = #tpu.dot_dimension_numbers<[1], [0], [0], [1], [0, 0, 1, 1], [], []>} : vector<36x128xbf16>, vector<128x128xbf16>, vector<36x128xf32> -> vector<36x128xf32>
    %78 = arith.addf %73, %77 : vector<36x128xf32>
    %c22 = arith.constant 22 : index
    %c0_85 = arith.constant 0 : index
    %79 = vector.load %arg6[%c22, %c0_85] : memref<68x128xbf16, #tpu.memory_space<vmem>>, vector<36x128xbf16>
    %c2_86 = arith.constant 2 : index
    %c2_87 = arith.constant 2 : index
    %c0_88 = arith.constant 0 : index
    %c0_89 = arith.constant 0 : index
    %80 = vector.load %arg2[%c2_86, %c2_87, %c0_88, %c0_89] : memref<4x4x128x128xbf16, #tpu.memory_space<vmem>>, vector<1x1x128x128xbf16>
    %81 = vector.shape_cast %80 : vector<1x1x128x128xbf16> to vector<128x128xbf16>
    %cst_90 = arith.constant dense<0.000000e+00> : vector<36x128xf32>
    %82 = tpu.matmul %79, %81, %cst_90 {dimension_numbers = #tpu.dot_dimension_numbers<[1], [0], [0], [1], [0, 0, 1, 1], [], []>} : vector<36x128xbf16>, vector<128x128xbf16>, vector<36x128xf32> -> vector<36x128xf32>
    %83 = arith.addf %78, %82 : vector<36x128xf32>
    %c23 = arith.constant 23 : index
    %c0_91 = arith.constant 0 : index
    %84 = vector.load %arg6[%c23, %c0_91] : memref<68x128xbf16, #tpu.memory_space<vmem>>, vector<36x128xbf16>
    %c2_92 = arith.constant 2 : index
    %c3_93 = arith.constant 3 : index
    %c0_94 = arith.constant 0 : index
    %c0_95 = arith.constant 0 : index
    %85 = vector.load %arg2[%c2_92, %c3_93, %c0_94, %c0_95] : memref<4x4x128x128xbf16, #tpu.memory_space<vmem>>, vector<1x1x128x128xbf16>
    %86 = vector.shape_cast %85 : vector<1x1x128x128xbf16> to vector<128x128xbf16>
    %cst_96 = arith.constant dense<0.000000e+00> : vector<36x128xf32>
    %87 = tpu.matmul %84, %86, %cst_96 {dimension_numbers = #tpu.dot_dimension_numbers<[1], [0], [0], [1], [0, 0, 1, 1], [], []>} : vector<36x128xbf16>, vector<128x128xbf16>, vector<36x128xf32> -> vector<36x128xf32>
    %88 = arith.addf %83, %87 : vector<36x128xf32>
    %c2_97 = arith.constant 2 : index
    %c0_98 = arith.constant 0 : index
    %c0_99 = arith.constant 0 : index
    %89 = vector.load %arg3[%c2_97, %c0_98, %c0_99] : memref<4x1x128xf32, #tpu.memory_space<vmem>>, vector<1x1x128xf32>
    %90 = vector.shape_cast %89 : vector<1x1x128xf32> to vector<1x128xf32>
    %91 = vector.broadcast %90 : vector<1x128xf32> to vector<36x128xf32>
    %92 = arith.addf %88, %91 : vector<36x128xf32>
    %cst_100 = arith.constant 0.000000e+00 : f32
    %93 = vector.broadcast %cst_100 : f32 to vector<36x128xf32>
    %94 = arith.maximumf %92, %93 : vector<36x128xf32>
    %95 = vector.broadcast %5 : vector<36x1xf32> to vector<36x128xf32>
    %96 = arith.mulf %94, %95 : vector<36x128xf32>
    %97 = arith.truncf %96 : vector<36x128xf32> to vector<36x128xbf16>
    %c16_101 = arith.constant 16 : index
    %c0_102 = arith.constant 0 : index
    %98 = vector.load %arg6[%c16_101, %c0_102] : memref<68x128xbf16, #tpu.memory_space<vmem>>, vector<36x128xbf16>
    tpu.vector_store %arg6[%c16_101, %c0_102], %97 {strides = array<i32>} : memref<68x128xbf16, #tpu.memory_space<vmem>>, vector<36x128xbf16>,
    %cst_103 = arith.constant 0.000000e+00 : f32
    %99 = vector.broadcast %cst_103 : f32 to vector<36x128xf32>
    %c16_104 = arith.constant 16 : index
    %c0_105 = arith.constant 0 : index
    %100 = vector.load %arg6[%c16_104, %c0_105] : memref<68x128xbf16, #tpu.memory_space<vmem>>, vector<36x128xbf16>
    %c3_106 = arith.constant 3 : index
    %c0_107 = arith.constant 0 : index
    %c0_108 = arith.constant 0 : index
    %c0_109 = arith.constant 0 : index
    %101 = vector.load %arg2[%c3_106, %c0_107, %c0_108, %c0_109] : memref<4x4x128x128xbf16, #tpu.memory_space<vmem>>, vector<1x1x128x128xbf16>
    %102 = vector.shape_cast %101 : vector<1x1x128x128xbf16> to vector<128x128xbf16>
    %cst_110 = arith.constant dense<0.000000e+00> : vector<36x128xf32>
    %103 = tpu.matmul %100, %102, %cst_110 {dimension_numbers = #tpu.dot_dimension_numbers<[1], [0], [0], [1], [0, 0, 1, 1], [], []>} : vector<36x128xbf16>, vector<128x128xbf16>, vector<36x128xf32> -> vector<36x128xf32>
    %104 = arith.addf %99, %103 : vector<36x128xf32>
    %c17_111 = arith.constant 17 : index
    %c0_112 = arith.constant 0 : index
    %105 = vector.load %arg6[%c17_111, %c0_112] : memref<68x128xbf16, #tpu.memory_space<vmem>>, vector<36x128xbf16>
    %c3_113 = arith.constant 3 : index
    %c1_114 = arith.constant 1 : index
    %c0_115 = arith.constant 0 : index
    %c0_116 = arith.constant 0 : index
    %106 = vector.load %arg2[%c3_113, %c1_114, %c0_115, %c0_116] : memref<4x4x128x128xbf16, #tpu.memory_space<vmem>>, vector<1x1x128x128xbf16>
    %107 = vector.shape_cast %106 : vector<1x1x128x128xbf16> to vector<128x128xbf16>
    %cst_117 = arith.constant dense<0.000000e+00> : vector<36x128xf32>
    %108 = tpu.matmul %105, %107, %cst_117 {dimension_numbers = #tpu.dot_dimension_numbers<[1], [0], [0], [1], [0, 0, 1, 1], [], []>} : vector<36x128xbf16>, vector<128x128xbf16>, vector<36x128xf32> -> vector<36x128xf32>
    %109 = arith.addf %104, %108 : vector<36x128xf32>
    %c22_118 = arith.constant 22 : index
    %c0_119 = arith.constant 0 : index
    %110 = vector.load %arg6[%c22_118, %c0_119] : memref<68x128xbf16, #tpu.memory_space<vmem>>, vector<36x128xbf16>
    %c3_120 = arith.constant 3 : index
    %c2_121 = arith.constant 2 : index
    %c0_122 = arith.constant 0 : index
    %c0_123 = arith.constant 0 : index
    %111 = vector.load %arg2[%c3_120, %c2_121, %c0_122, %c0_123] : memref<4x4x128x128xbf16, #tpu.memory_space<vmem>>, vector<1x1x128x128xbf16>
    %112 = vector.shape_cast %111 : vector<1x1x128x128xbf16> to vector<128x128xbf16>
    %cst_124 = arith.constant dense<0.000000e+00> : vector<36x128xf32>
    %113 = tpu.matmul %110, %112, %cst_124 {dimension_numbers = #tpu.dot_dimension_numbers<[1], [0], [0], [1], [0, 0, 1, 1], [], []>} : vector<36x128xbf16>, vector<128x128xbf16>, vector<36x128xf32> -> vector<36x128xf32>
    %114 = arith.addf %109, %113 : vector<36x128xf32>
    %c23_125 = arith.constant 23 : index
    %c0_126 = arith.constant 0 : index
    %115 = vector.load %arg6[%c23_125, %c0_126] : memref<68x128xbf16, #tpu.memory_space<vmem>>, vector<36x128xbf16>
    %c3_127 = arith.constant 3 : index
    %c3_128 = arith.constant 3 : index
    %c0_129 = arith.constant 0 : index
    %c0_130 = arith.constant 0 : index
    %116 = vector.load %arg2[%c3_127, %c3_128, %c0_129, %c0_130] : memref<4x4x128x128xbf16, #tpu.memory_space<vmem>>, vector<1x1x128x128xbf16>
    %117 = vector.shape_cast %116 : vector<1x1x128x128xbf16> to vector<128x128xbf16>
    %cst_131 = arith.constant dense<0.000000e+00> : vector<36x128xf32>
    %118 = tpu.matmul %115, %117, %cst_131 {dimension_numbers = #tpu.dot_dimension_numbers<[1], [0], [0], [1], [0, 0, 1, 1], [], []>} : vector<36x128xbf16>, vector<128x128xbf16>, vector<36x128xf32> -> vector<36x128xf32>
    %119 = arith.addf %114, %118 : vector<36x128xf32>
    %c3_132 = arith.constant 3 : index
    %c0_133 = arith.constant 0 : index
    %c0_134 = arith.constant 0 : index
    %120 = vector.load %arg3[%c3_132, %c0_133, %c0_134] : memref<4x1x128xf32, #tpu.memory_space<vmem>>, vector<1x1x128xf32>
    %121 = vector.shape_cast %120 : vector<1x1x128xf32> to vector<1x128xf32>
    %122 = vector.broadcast %121 : vector<1x128xf32> to vector<36x128xf32>
    %123 = arith.addf %119, %122 : vector<36x128xf32>
    %cst_135 = arith.constant 0.000000e+00 : f32
    %124 = vector.broadcast %cst_135 : f32 to vector<36x128xf32>
    %125 = arith.subf %124, %123 : vector<36x128xf32>
    %126 = math.exp %125 : vector<36x128xf32>
    %cst_136 = arith.constant 1.000000e+00 : f32
    %127 = vector.broadcast %cst_136 : f32 to vector<36x128xf32>
    %128 = arith.addf %127, %126 : vector<36x128xf32>
    %cst_137 = arith.constant 1.000000e+00 : f32
    %129 = vector.broadcast %cst_137 : f32 to vector<36x128xf32>
    %130 = arith.divf %129, %128 : vector<36x128xf32>
    %131 = vector.broadcast %5 : vector<36x1xf32> to vector<36x128xf32>
    %132 = arith.mulf %130, %131 : vector<36x128xf32>
    %c0_138 = arith.constant 0 : index
    %c0_139 = arith.constant 0 : index
    %c0_140 = arith.constant 0 : index
    %133 = vector.load %arg5[%c0_138, %c0_139, %c0_140] : memref<1x36x128xf32, #tpu.memory_space<vmem>>, vector<1x36x128xf32>
    %134 = vector.shape_cast %133 : vector<1x36x128xf32> to vector<36x128xf32>
    %135 = vector.shape_cast %132 : vector<36x128xf32> to vector<1x36x128xf32>
    tpu.vector_store %arg5[%c0_138, %c0_139, %c0_140], %135 {strides = array<i32>} : memref<1x36x128xf32, #tpu.memory_space<vmem>>, vector<1x36x128xf32>,
    return
  }
  func.func @transform_0(%arg0: i32) -> (i32, i32, i32) {
    %c0_i32 = arith.constant 0 : i32
    %c0_i32_0 = arith.constant 0 : i32
    %c0_i32_1 = arith.constant 0 : i32
    return %arg0, %c0_i32, %c0_i32_0 : i32, i32, i32
  }
  func.func @transform_1(%arg0: i32) -> (i32, i32, i32, i32) {
    %c0_i32 = arith.constant 0 : i32
    %c0_i32_0 = arith.constant 0 : i32
    %c0_i32_1 = arith.constant 0 : i32
    %c0_i32_2 = arith.constant 0 : i32
    %c0_i32_3 = arith.constant 0 : i32
    return %c0_i32, %c0_i32_0, %c0_i32_1, %c0_i32_2 : i32, i32, i32, i32
  }
  func.func @transform_2(%arg0: i32) -> (i32, i32, i32) {
    %c0_i32 = arith.constant 0 : i32
    %c0_i32_0 = arith.constant 0 : i32
    %c0_i32_1 = arith.constant 0 : i32
    %c0_i32_2 = arith.constant 0 : i32
    return %c0_i32, %c0_i32_0, %c0_i32_1 : i32, i32, i32
  }
  func.func @transform_3(%arg0: i32) -> (i32, i32) {
    %c0_i32 = arith.constant 0 : i32
    %c0_i32_0 = arith.constant 0 : i32
    %c0_i32_1 = arith.constant 0 : i32
    return %c0_i32, %c0_i32_0 : i32, i32
  }
  func.func @transform_4(%arg0: i32) -> (i32, i32, i32) {
    %c0_i32 = arith.constant 0 : i32
    %c0_i32_0 = arith.constant 0 : i32
    %c0_i32_1 = arith.constant 0 : i32
    return %arg0, %c0_i32, %c0_i32_0 : i32, i32, i32
  }
}

</mosaic_0001>

<bundles_post_ra>
// kernel: tile.28
= control target key start
LH: loop header
LB: loop body
LE: loop exit
PB: predicated region body
PF: predicated region fallthrough
CT: control target
= control target key end

     0   :  { %s28_s0 = inlined_call_operand.vmem [shape: f32[3], index: 0, kind: input, shape index: {}]   ;;  %s29_s1 = inlined_call_operand.vmem [shape: f32[16,3], index: 1, kind: output, shape index: {}]  }
   0x1   :  { %v4_v0 = vld [vmem:[%s28_s0] ss:$0 sm:$0xff] }
   0x2   :  { %5 = vst [vmem:[%s29_s1] sm:$0xff] %v4_v0 }
   0x3   :  { %8 = vst [vmem:[%s29_s1 + $0x8] sm:$0xff] %v4_v0 }

// kernel: tile.29
= control target key start
LH: loop header
LB: loop body
LE: loop exit
PB: predicated region body
PF: predicated region fallthrough
CT: control target
= control target key end

     0   :  { %s131_s10 = smov 45   ;;  %s132_s11 = smov 39   ;;  %vm3_vm0 = vcmask 23552   ;;  %vm9_vm1 = vcmask 392552   ;;  %vm15_vm2 = vcmask 367952   ;;  %vm21_vm3 = vcmask 343352   ;;  %s207_s0 = inlined_call_operand.vmem [shape: f32[16,3], index: 0, kind: input, shape index: {}]   ;;  %s208_s1 = inlined_call_operand.vmem [shape: f32[48], index: 1, kind: output, shape index: {}]  }
   0x1   :  { %v101_v0 = vld [vmem:[%s207_s0 + $0xf] sm:$0x1]   ;;  %v103_v1 = vld [vmem:[%s207_s0 + $0xd] sm:$0x1]   ;;  %v105_v2 = vld [vmem:[%s207_s0 + $0xb] sm:$0x1]  }
   0x2   :  { %7 = vrot.lane.b32.xlu0 %v101_v0, %s131_s10  ;;  %19 = vrot.lane.b32.xlu1 %v103_v1, %s132_s11  ;;  %s133_s14 = smov 33   ;;  %v102_v3 = vld [vmem:[%s207_s0 + $0xe] sm:$0x1]   ;;  %v104_v4 = vld [vmem:[%s207_s0 + $0xc] sm:$0x1]   ;;  %s134_s19 = smov 42  }
   0x3   :  { %31 = vrot.lane.b32.xlu2 %v105_v2, %s133_s14  ;;  %s135_s20 = smov 36   ;;  %v106_v5 = vld [vmem:[%s207_s0 + $0xa] sm:$0x1]   ;;  %s136_s23 = smov 30   ;;  %v107_v6 = vld [vmem:[%s207_s0 + $0x9] sm:$0x1]  }
   0x4   :  { %v108_v7 = vld [vmem:[%s207_s0 + $0x8] sm:$0x1]   ;;  %s137_s28 = smov 27   ;;  %s138_s29 = smov 24   ;;  %v109_v8 = vld [vmem:[%s207_s0 + $0x7] sm:$0x1]  }
   0x5   :  { %s139_s3 = smov 21   ;;  %v110_v9 = vld [vmem:[%s207_s0 + $0x6] sm:$0x1]   ;;  %v111_v10 = vld [vmem:[%s207_s0 + $0x5] sm:$0x1]   ;;  %s140_s8 = smov 18  }
   0x6   :  { %s141_s9 = smov 15   ;;  %v112_v11 = vld [vmem:[%s207_s0 + $0x4] sm:$0x1]   ;;  %s142_s12 = smov 12   ;;  %v113_v12 = vld [vmem:[%s207_s0 + $0x3] sm:$0x1]  }
   0x7   :  { %v114_v13 = vld [vmem:[%s207_s0 + $0x2] sm:$0x1]   ;;  %s143_s17 = smov 9   ;;  %s144_s18 = smov 6   ;;  %v115_v14 = vld [vmem:[%s207_s0 + $0x1] sm:$0x1]  }
   0x8   :  { %s145_s21 = smov 3   ;;  %v2_v15 = vld [vmem:[%s207_s0] sm:$0x1]   ;;  %vm27_vm4 = vcmask 318752   ;;  %vm33_vm5 = vcmask 294152   ;;  %vm39_vm6 = vcmask 269552  }
   0x9   :  { %4 = vst.msk [vmem:[#allocation0] sm:$0x1] %vm3_vm0, %v2_v15   ;;  %vm45_vm7 = vcmask 244952   ;;  %vm51_vm8 = vcmask 220352   ;;  %vm57_vm9 = vcmask 195752   ;;  %vm63_vm10 = vcmask 171152  }
   0xa   :  { %13 = vrot.lane.b32.xlu0 %v102_v3, %s134_s19  ;;  %25 = vrot.lane.b32.xlu1 %v104_v4, %s135_s20  ;;  %vm69_vm11 = vcmask 146552   ;;  %vm75_vm12 = vcmask 121952   ;;  %vm81_vm13 = vcmask 97352   ;;  %vm87_vm14 = vcmask 72752  }
   0xb   :  { %37 = vrot.lane.b32.xlu2 %v106_v5, %s136_s23  ;;  %vm93_vm15 = vcmask 48152  }
  0x12   :  { %43 = vrot.lane.b32.xlu0 %v107_v6, %s137_s28  ;;  %49 = vrot.lane.b32.xlu1 %v108_v7, %s138_s29 }
  0x13   :  { %55 = vrot.lane.b32.xlu2 %v109_v8, %s139_s3 }
  0x1a   :  { %61 = vrot.lane.b32.xlu0 %v110_v9, %s140_s8  ;;  %67 = vrot.lane.b32.xlu1 %v111_v10, %s141_s9 }
  0x1b   :  { %73 = vrot.lane.b32.xlu2 %v112_v11, %s142_s12 }
  0x22   :  { %79 = vrot.lane.b32.xlu0 %v113_v12, %s143_s17  ;;  %85 = vrot.lane.b32.xlu1 %v114_v13, %s144_s18 }
  0x23   :  { %91 = vrot.lane.b32.xlu2 %v115_v14, %s145_s21 }
  0x5d   :  { %v32_v16 = vpop.permute.xlu2 %31  }
  0x65   :  { %v38_v17 = vpop.permute.xlu2 %37  }
  0x6d   :  { %v56_v18 = vpop.permute.xlu2 %55  }
  0x74   :  { %v8_v19 = vpop.permute.xlu0 %7   ;;  %v20_v20 = vpop.permute.xlu1 %19  }
  0x75   :  { %10 = vst.msk [vmem:[#allocation0] sm:$0x1] %vm9_vm1, %v8_v19   ;;  %v74_v21 = vpop.permute.xlu2 %73  }
  0x7c   :  { %v14_v22 = vpop.permute.xlu0 %13   ;;  %v26_v23 = vpop.permute.xlu1 %25  }
  0x7d   :  { %16 = vst.msk [vmem:[#allocation0] sm:$0x1] %vm15_vm2, %v14_v22   ;;  %v92_v24 = vpop.permute.xlu2 %91  }
  0x7e   :  { %22 = vst.msk [vmem:[#allocation0] sm:$0x1] %vm21_vm3, %v20_v20  }
  0x7f   :  { %28 = vst.msk [vmem:[#allocation0] sm:$0x1] %vm27_vm4, %v26_v23  }
  0x80   :  { %34 = vst.msk [vmem:[#allocation0] sm:$0x1] %vm33_vm5, %v32_v16  }
  0x81   :  { %40 = vst.msk [vmem:[#allocation0] sm:$0x1] %vm39_vm6, %v38_v17  }
  0x84   :  { %v44_v25 = vpop.permute.xlu0 %43   ;;  %v50_v26 = vpop.permute.xlu1 %49  }
  0x85   :  { %46 = vst.msk [vmem:[#allocation0] sm:$0x1] %vm45_vm7, %v44_v25  }
  0x86   :  { %52 = vst.msk [vmem:[#allocation0] sm:$0x1] %vm51_vm8, %v50_v26  }
  0x87   :  { %58 = vst.msk [vmem:[#allocation0] sm:$0x1] %vm57_vm9, %v56_v18  }
  0x8c   :  { %v62_v27 = vpop.permute.xlu0 %61   ;;  %v68_v28 = vpop.permute.xlu1 %67  }
  0x8d   :  { %64 = vst.msk [vmem:[#allocation0] sm:$0x1] %vm63_vm10, %v62_v27  }
  0x8e   :  { %70 = vst.msk [vmem:[#allocation0] sm:$0x1] %vm69_vm11, %v68_v28  }
  0x8f   :  { %76 = vst.msk [vmem:[#allocation0] sm:$0x1] %vm75_vm12, %v74_v21  }
  0x94   :  { %v80_v29 = vpop.permute.xlu0 %79   ;;  %v86_v30 = vpop.permute.xlu1 %85  }
  0x95   :  { %82 = vst.msk [vmem:[#allocation0] sm:$0x1] %vm81_vm13, %v80_v29  }
  0x96   :  { %88 = vst.msk [vmem:[#allocation0] sm:$0x1] %vm87_vm14, %v86_v30  }
  0x97   :  { %94 = vst.msk [vmem:[#allocation0] sm:$0x1] %vm93_vm15, %v92_v24  }
  0x9e   :  { %v97_v31 = vld [vmem:[#allocation0] sm:$0x1] }
  0x9f   :  { %100 = vst [vmem:[%s208_s1] sm:$0x1] %v97_v31 }

// kernel: tile.23
= control target key start
LH: loop header
LB: loop body
LE: loop exit
PB: predicated region body
PF: predicated region fallthrough
CT: control target
= control target key end

     0   :  { %s22_s0 = inlined_call_operand.vmem [shape: f32[8], index: 0, kind: input, shape index: {}]   ;;  %s23_s1 = inlined_call_operand.vmem [shape: f32[4,8], index: 1, kind: output, shape index: {}]  }
   0x1   :  { %v4_v0 = vld [vmem:[%s22_s0] ss:$0 sm:$0xff] }
   0x2   :  { %5 = vst [vmem:[%s23_s1] sm:$0xf] %v4_v0 }

// kernel: tile.24
= control target key start
LH: loop header
LB: loop body
LE: loop exit
PB: predicated region body
PF: predicated region fallthrough
CT: control target
= control target key end

     0   :  { %s37_s8 = smov 8   ;;  %s38_s9 = smov 16   ;;  %vm7_vm0 = vcmask 64512   ;;  %vm13_vm1 = vcmask 261312   ;;  %vm19_vm2 = vcmask 195712   ;;  %vm25_vm3 = vcmask 130112   ;;  %s55_s0 = inlined_call_operand.vmem [shape: f32[4,8], index: 0, kind: input, shape index: {}]   ;;  %s56_s1 = inlined_call_operand.vmem [shape: f32[32], index: 1, kind: output, shape index: {}]  }
   0x1   :  { %v4_v0 = vld [vmem:[%s55_s0] sm:$0xf]  ;;  %s36_s0 = smov 24  }
   0x2   :  { %5 = vst [vmem:[#allocation1] sm:$0xf] %v4_v0 }
   0x9   :  { %v10_v1 = vld [vmem:[#allocation1 + $0x3] sm:$0x1]   ;;  %v22_v2 = vld [vmem:[#allocation1 + $0x1] sm:$0x1]   ;;  %v16_v3 = vld [vmem:[#allocation1 + $0x2] sm:$0x1]  }
   0xa   :  { %11 = vrot.lane.b32.xlu0 %v10_v1, %s36_s0  ;;  %23 = vrot.lane.b32.xlu1 %v22_v2, %s37_s8  ;;  %v6_v4 = vld [vmem:[#allocation1] sm:$0x1]  }
   0xb   :  { %8 = vst.msk [vmem:[#allocation0] sm:$0x1] %vm7_vm0, %v6_v4  }
  0x12   :  { %17 = vrot.lane.b32.xlu0 %v16_v3, %s38_s9 }
  0x7c   :  { %v12_v5 = vpop.permute.xlu0 %11   ;;  %v24_v6 = vpop.permute.xlu1 %23  }
  0x7d   :  { %14 = vst.msk [vmem:[#allocation0] sm:$0x1] %vm13_vm1, %v12_v5  }
  0x84   :  { %v18_v7 = vpop.permute.xlu0 %17  }
  0x85   :  { %20 = vst.msk [vmem:[#allocation0] sm:$0x1] %vm19_vm2, %v18_v7  }
  0x86   :  { %26 = vst.msk [vmem:[#allocation0] sm:$0x1] %vm25_vm3, %v24_v6  }
  0x8d   :  { %v29_v8 = vld [vmem:[#allocation0] sm:$0x1] }
  0x8e   :  { %32 = vst [vmem:[%s56_s1] sm:$0x1] %v29_v8 }

// kernel: autoencoder_forward.1
= control target key start
LH: loop header
LB: loop body
LE: loop exit
PB: predicated region body
PF: predicated region fallthrough
CT: control target
= control target key end

     0   :  { %s3508_s15 = smov 0   ;;  %s4053_s0 = inlined_call_operand.vmem [shape: bf16[2,36,128], index: 0, kind: input, shape index: {}]   ;;  %s4054_s1 = inlined_call_operand.vmem [shape: bf16[4,4,128,128], index: 1, kind: input, shape index: {}]   ;;  %s4055_s2 = inlined_call_operand.vmem [shape: f32[4,1,128], index: 2, kind: input, shape index: {}]   ;;  %s4056_s3 = inlined_call_operand.vmem [shape: f32[36,1], index: 3, kind: input, shape index: {}]   ;;  %s4057_s4 = inlined_call_operand.vmem [shape: f32[2,36,128], index: 4, kind: output, shape index: {}]  }
   0x1 LB: > { %s2408_s16 = sadd.s32 4294967295, %s3480_s15   ;;  %p2412_p0 = scmp.ge.s32.totalorder %s3480_s15, 1  ;;  %s3480_s15 = sphi %s3508_s15, %s14_s15  }
   0x2   : > { %p162_p1 = scmp.lt.s32.totalorder %s3480_s15, 3 }
   0x4   : > { %p163_p2 = pnand %p2412_p0, %p162_p1 }
   0x5   : > { %p188_p3 = scmp.lt.s32.totalorder (!%p163_p2), %s2408_s16, 1 }
   0x6   : > { %166 = sbr.rel (%p163_p2) target bundleno = 800 (0x320), region = 36 }
   0xb   : > { %v3228_v0 = vld [vmem:[%s4054_s1 + $0x78] sm:$0xff]  ;;  %v3482_v4 = vmov 0   ;;  %v3227_v5 = vld [vmem:[%s4054_s1 + $0x70] sm:$0xff]  ;;  %s4059_s16 = smov (!%p188_p3, %s2408_s16), 1  ;;  %v3226_v9 = vld [vmem:[%s4054_s1 + $0x68] sm:$0xff]  ;;  %vm275_vm0 = vcmask 1046528  }
   0xc   : > { %v3220_v1 = vld [vmem:[%s4054_s1 + $0x38] sm:$0xff]  ;;  %3441 = vset.pattern.permute.xlu0 %v3482_v4  ;;  %3442 = vset.pattern.permute.xlu1 %v3482_v4  ;;  %v3219_v6 = vld [vmem:[%s4054_s1 + $0x30] sm:$0xff]  ;;  %200 = vst [vmem:[#allocation2 + $0x4] sm:$0xf] %v3482_v4  ;;  %s3430_s7 = smul.u32 20, %s4059_s16  ;;  %v3218_v10 = vld [vmem:[%s4054_s1 + $0x28] sm:$0xff] }
   0xd   : > { %v3236_v2 = vld [vmem:[%s4054_s1 + $0xb8] sm:$0xff]  ;;  %332 = vmatpush.bf16.msra.mxu0 %v3228_v0  ;;  %433 = vmatpush.bf16.msra.mxu1 %v3220_v1  ;;  %v3235_v7 = vld [vmem:[%s4054_s1 + $0xb0] sm:$0xff]  ;;  %201 = vst [vmem:[#allocation2 + $0x8] sm:$0xf] %v3482_v4  ;;  %v3234_v11 = vld [vmem:[%s4054_s1 + $0xa8] sm:$0xff]  ;;  %vm1522_vm3 = vcmask 1044480  }
   0xe   : > { %v3244_v3 = vld [vmem:[%s4054_s1 + $0xf8] sm:$0xff]  ;;  %572 = vmatpush.bf16.msra.mxu2 %v3236_v2  ;;  %v3243_v8 = vld [vmem:[%s4054_s1 + $0xf0] sm:$0xff]  ;;  %202 = vst [vmem:[#allocation2 + $0xc] sm:$0xf] %v3482_v4  ;;  %3443 = vset.pattern.permute.xlu2 %v3482_v4  ;;  %v3242_v12 = vld [vmem:[%s4054_s1 + $0xe8] sm:$0xff]  ;;  %s192_s20 = scalar_lea.vmem %s4053_s0, %s3430_s7  ;;  %s3431_s5 = smul.u32 40, %s4059_s16 }
   0xf   : > { %671 = vmatpush.bf16.msra.mxu3 %v3244_v3  ;;  %203 = vst [vmem:[#allocation2 + $0x10] sm:$0xf] %v3482_v4  ;;  %v3225_v13 = vld [vmem:[%s4054_s1 + $0x60] sm:$0xff]  ;;  %v210_v18 = vld [vmem:[%s192_s20 + $0x8] sm:$0xf]  ;;  %v3224_v19 = vld [vmem:[%s4054_s1 + $0x58] sm:$0xff] }
  0x10   : > { %204 = vst [vmem:[#allocation2 + $0x14] sm:$0xf] %v3482_v4  ;;  %v3217_v14 = vld [vmem:[%s4054_s1 + $0x20] sm:$0xff]  ;;  %v3216_v20 = vld [vmem:[%s4054_s1 + $0x18] sm:$0xff]  ;;  %v211_v22 = vld [vmem:[%s192_s20 + $0xc] sm:$0xf]  ;;  %s4037_s8 = scalar_lea.vmem %s4057_s4, %s3431_s5 }
  0x11   : > { %333 = vmatpush.bf16.msra.mxu0 %v3227_v5  ;;  %434 = vmatpush.bf16.msra.mxu1 %v3219_v6  ;;  %205 = vst [vmem:[#allocation2 + $0x18] sm:$0xf] %v3482_v4  ;;  %v208_v15 = vld [vmem:[%s192_s20] sm:$0xff]   ;;  %v212_v23 = vld [vmem:[%s192_s20 + $0x10] sm:$0x3]  ;;  %v3232_v24 = vld [vmem:[%s4054_s1 + $0x98] sm:$0xff] }
  0x12   : > { %573 = vmatpush.bf16.msra.mxu2 %v3235_v7  ;;  %206 = vst [vmem:[#allocation2 + $0x1c] sm:$0xf] %v3482_v4  ;;  %v3233_v16 = vld [vmem:[%s4054_s1 + $0xa0] sm:$0xff]  ;;  %v3240_v25 = vld [vmem:[%s4054_s1 + $0xd8] sm:$0xff]  ;;  %v3223_v27 = vld [vmem:[%s4054_s1 + $0x50] sm:$0xff] }
  0x13   : > { %672 = vmatpush.bf16.msra.mxu3 %v3243_v8  ;;  %v3241_v17 = vld [vmem:[%s4054_s1 + $0xe0] sm:$0xff]  ;;  %213 = vst [vmem:[#allocation2 + $0x8] sm:$0xff] %v208_v15   ;;  %v3215_v28 = vld [vmem:[%s4054_s1 + $0x10] sm:$0xff]  ;;  %v3222_v40 = vld [vmem:[%s4054_s1 + $0x48] sm:$0xff]  ;;  %vm358_vm1 = vsmask.f32 7424 }
  0x14   : > { %215 = vst [vmem:[#allocation2 + $0x10] sm:$0xf] %v210_v18  ;;  %v3476_v21 = vld [vmem:[#allocation2 + $0x4] sm:$0xe]  ;;  %v3231_v29 = vld [vmem:[%s4054_s1 + $0x90] sm:$0xff]  ;;  %v3214_v41 = vld [vmem:[%s4054_s1 + $0x8] sm:$0xff] }
  0x15   : > { %334 = vmatpush.bf16.msra.mxu0 %v3226_v9  ;;  %435 = vmatpush.bf16.msra.mxu1 %v3218_v10  ;;  %216 = vst [vmem:[#allocation2 + $0x14] sm:$0xf] %v211_v22  ;;  %v3408_v26 = vld [vmem:[#allocation2 + $0x4] sm:$0x8]  ;;  %v3239_v30 = vld [vmem:[%s4054_s1 + $0xd0] sm:$0xff]  ;;  %v3230_v46 = vld [vmem:[%s4054_s1 + $0x88] sm:$0xff] }
  0x16   : > { %574 = vmatpush.bf16.msra.mxu2 %v3234_v11  ;;  %217 = vst [vmem:[#allocation2 + $0x18] sm:$0x3] %v212_v23  ;;  %v218_v37 = vld [vmem:[%s4056_s3] sm:$0xff]  ;;  %v3238_v47 = vld [vmem:[%s4054_s1 + $0xc8] sm:$0xff]  ;;  %vm494_vm2 = vsmask.f32 4352 }
  0x17   : > { %673 = vmatpush.bf16.msra.mxu3 %v3242_v12  ;;  %715 = vperm.xlu0 %3441, %v218_v37   ;;  %v3221_v57 = vld [vmem:[%s4054_s1 + $0x40] sm:$0xff]  ;;  %v221_v22 = vld [vmem:[%s4056_s3 + $0x18] sm:$0xff] }
  0x18   : > { %v3213_v58 = vld [vmem:[%s4054_s1] sm:$0xff]  ;;  %v3273_v37 = vld [vmem:[%s4054_s1 + $0x1d8] sm:$0xff] }
  0x19   : > { %335 = vmatpush.bf16.msra.mxu0 %v3225_v13  ;;  %436 = vmatpush.bf16.msra.mxu1 %v3217_v14  ;;  %v3229_v63 = vld [vmem:[%s4054_s1 + $0x80] sm:$0xff]  ;;  %v220_v13 = vld [vmem:[%s4056_s3 + $0x10] sm:$0xff]  ;;  %v219_v14 = vld [vmem:[%s4056_s3 + $0x8] sm:$0xff] }
  0x1a   : > { %575 = vmatpush.bf16.msra.mxu2 %v3233_v16  ;;  %v224_v31 = vld [vmem:[#allocation2 + $0x4] sm:$0xff]   ;;  %725 = vperm.xlu1 %3442, %v220_v13  }
  0x1b   : > { %674 = vmatpush.bf16.msra.mxu3 %v3241_v17  ;;  %v3475_v32 = vld [vmem:[#allocation2 + $0x4] sm:$0xf0]  ;;  %v3594_v34 = vld [vmem:[#allocation2 + $0xc] sm:$0xff]  ;;  %v360_v48 = vshrl.u32 %v224_v31, 16  ;;  %v362_v49 = vshll.u32 %v224_v31, 16  ;;  %v3237_v0 = vld [vmem:[%s4054_s1 + $0xc0] sm:$0xff] }
  0x1c   : > { %v3425_v33 = vld [vmem:[#allocation2 + $0x4] sm:$0xf0]   ;;  %v3426_v35 = vld [vmem:[#allocation2 + $0xc] sm:$0xff]   ;;  %v3477_v38 = vor.u32 %v3476_v21, %v3475_v32  ;;  %v367_v39 = vshll.u32 %v3594_v34, 16  ;;  %v277_v60 = vrot.slane %v3594_v34, 1  ;;  %v371_v18 = vshrl.u32 %v3594_v34, 16 }
  0x1d   : > { %336 = vmatpush.bf16.msra.mxu0 %v3224_v19  ;;  %437 = vmatpush.bf16.msra.mxu1 %v3216_v20  ;;  %v3409_v36 = vor.u32 %v3425_v33, %v3408_v26  ;;  %v504_v44 = vshrl.u32 %v3426_v35, 16  ;;  %v507_v45 = vshll.u32 %v3426_v35, 16  ;;  %v3612_v50 = vld [vmem:[#allocation2 + $0x10] sm:$0xff]   ;;  %v461_v55 = vld [vmem:[#allocation2 + $0x18] sm:$0x3]  ;;  %v364_v56 = vrot.slane %v362_v49, 1 }
  0x1e   : > { %576 = vmatpush.bf16.msra.mxu2 %v3232_v24  ;;  %v276_v59 = vrot.slane %v3477_v38, 1  ;;  %v369_v61 = vrot.slane %v367_v39, 1  ;;  %v227_v3 = vld [vmem:[#allocation2 + $0x14] sm:$0x7]  ;;  %v3357_v4 = vunpack.c.h.b16 %v3612_v50  ;;  %v490_v5 = vunpack.c.l.b16 %v461_v55  ;;  %v3396_v10 = vld [vmem:[#allocation2 + $0x8] sm:$0xff]   ;;  %v3277_v33 = vld [vmem:[%s4054_s1 + $0x1f8] sm:$0xff] }
  0x1f   : > { %675 = vmatpush.bf16.msra.mxu3 %v3240_v25  ;;  %v496_v42 = vshrl.u32 %v3409_v36, 16  ;;  %v499_v43 = vshll.u32 %v3409_v36, 16  ;;  %v506_v53 = vrot.slane %v504_v44, 3  ;;  %v509_v54 = vrot.slane %v507_v45, 4  ;;  %720 = vperm.xlu0 %3441, %v219_v14   ;;  %v222_v17 = vld [vmem:[%s4056_s3 + $0x20] sm:$0xf] }
  0x20   : > { %v365_v1 = vor.u32 %v364_v56, %v360_v48  ;;  %v278_v6 = vsel %vm275_vm0, %v276_v59, %v277_v60  ;;  %v271_v8 = vunpack.c.l.b16 %v227_v3  ;;  %v493_v11 = vpack.c.b16 %v490_v5, %v3357_v4  ;;  %735 = vperm.xlu2 %3443, %v222_v17   ;;  %v3276_v34 = vld [vmem:[%s4054_s1 + $0x1f0] sm:$0xff]  ;;  %v3275_v35 = vld [vmem:[%s4054_s1 + $0x1e8] sm:$0xff]  ;;  %v3274_v36 = vld [vmem:[%s4054_s1 + $0x1e0] sm:$0xff] }
  0x21   : > { %337 = vmatpush.bf16.msra.mxu0 %v3223_v27  ;;  %438 = vmatpush.bf16.msra.mxu1 %v3215_v28  ;;  %v498_v51 = vrot.slane %v496_v42, 3  ;;  %v501_v52 = vrot.slane %v499_v43, 4  ;;  %v510_v2 = vor.u32 %v509_v54, %v506_v53  ;;  %v373_v24 = vor.u32 %v371_v18, %v369_v61  ;;  %v3269_v38 = vld [vmem:[%s4054_s1 + $0x1b8] sm:$0xff]  ;;  %v3272_v39 = vld [vmem:[%s4054_s1 + $0x1d0] sm:$0xff]  ;;  %v3270_v44 = vld [vmem:[%s4054_s1 + $0x1c0] sm:$0xff] }
  0x22   : > { %577 = vmatpush.bf16.msra.mxu2 %v3231_v29  ;;  %v370_v7 = vsel %vm358_vm1, %v365_v1, %v369_v61  ;;  %v274_v12 = vpack.c.b16 %v271_v8, %v271_v8  ;;  %v513_v15 = vshrl.u32 %v493_v11, 16  ;;  %v516_v16 = vshll.u32 %v493_v11, 16  ;;  %730 = vperm.xlu1 %3442, %v221_v22   ;;  %v3253_v42 = vld [vmem:[%s4054_s1 + $0x138] sm:$0xff]  ;;  %v3268_v43 = vld [vmem:[%s4054_s1 + $0x1b0] sm:$0xff]  ;;  %v3258_v53 = vld [vmem:[%s4054_s1 + $0x160] sm:$0xff] }
  0x23   : > { %676 = vmatpush.bf16.msra.mxu3 %v3239_v30  ;;  %v502_v62 = vor.u32 %v501_v52, %v498_v51  ;;  %v619_v32 = vpack.c.b16 %v490_v5, %v490_v5  ;;  %v3260_v45 = vld [vmem:[%s4054_s1 + $0x170] sm:$0xff]  ;;  %v3251_v51 = vld [vmem:[%s4054_s1 + $0x128] sm:$0xff]  ;;  %v3266_v52 = vld [vmem:[%s4054_s1 + $0x1a0] sm:$0xff] }
  0x24   : > { %v375_v19 = vshll.u32 %v274_v12, 16  ;;  %v515_v20 = vrot.slane %v513_v15, 3  ;;  %v518_v21 = vrot.slane %v516_v16, 4  ;;  %v279_v23 = vrot.slane %v274_v12, 1  ;;  %v3250_v55 = vld [vmem:[%s4054_s1 + $0x120] sm:$0xff]  ;;  %v3256_v1 = vld [vmem:[%s4054_s1 + $0x150] sm:$0xff] }
  0x25   : > { %338 = vmatpush.bf16.msra.mxu0 %v3222_v40  ;;  %439 = vmatpush.bf16.msra.mxu1 %v3214_v41  ;;  %v511_v9 = vsel %vm494_vm2, %v502_v62, %v510_v2  ;;  %v379_v30 = vshrl.u32 %v274_v12, 16  ;;  %v3271_v40 = vld [vmem:[%s4054_s1 + $0x1c8] sm:$0xff]  ;;  %v3261_v41 = vld [vmem:[%s4054_s1 + $0x178] sm:$0xff]  ;;  %v3725_v3 = vld [vmem:[%s4055_s2] ss:$0 sm:$0xff] }
  0x26   : > { %578 = vmatpush.bf16.msra.mxu2 %v3230_v46  ;;  %v377_v25 = vrot.slane %v375_v19, 1  ;;  %v519_v26 = vor.u32 %v518_v21, %v515_v20  ;;  %v280_v27 = vsel %vm275_vm0, %v277_v60, %v279_v23  ;;  %v3252_v46 = vld [vmem:[%s4054_s1 + $0x130] sm:$0xff]  ;;  %v3249_v62 = vld [vmem:[%s4054_s1 + $0x118] sm:$0xff]  ;;  %v3247_v14 = vld [vmem:[%s4054_s1 + $0x108] sm:$0xff] }
  0x27   : > { %677 = vmatpush.bf16.msra.mxu3 %v3238_v47  ;;  %v3259_v47 = vld [vmem:[%s4054_s1 + $0x168] sm:$0xff]  ;;  %v3248_v4 = vld [vmem:[%s4054_s1 + $0x110] sm:$0xff]  ;;  %v3254_v17 = vld [vmem:[%s4054_s1 + $0x140] sm:$0xff] }
  0x28   : > { %v378_v28 = vsel %vm358_vm1, %v373_v24, %v377_v25  ;;  %v520_v29 = vsel %vm494_vm2, %v510_v2, %v519_v26  ;;  %v381_v31 = vor.u32 %v379_v30, %v377_v25  ;;  %v3263_v16 = vld [vmem:[%s4054_s1 + $0x188] sm:$0xff]  ;;  %v3246_v21 = vld [vmem:[%s4054_s1 + $0x100] sm:$0xff] }
  0x29   : > { %339 = vmatpush.bf16.msra.mxu0 %v3221_v57  ;;  %440 = vmatpush.bf16.msra.mxu1 %v3213_v58  ;;  %v3257_v58 = vld [vmem:[%s4054_s1 + $0x158] sm:$0xff] }
  0x2a   : > { %579 = vmatpush.bf16.msra.mxu2 %v3229_v63 }
  0x2b   : > { %678 = vmatpush.bf16.msra.mxu3 %v3237_v0  ;;  %v3265_v0 = vld [vmem:[%s4054_s1 + $0x198] sm:$0xff] }
  0x2c   : > { %340 = vmatmul.bf16.vlgmr.msra.gmra.mxu0 %v278_v6  ;;  %441 = vmatmul.bf16.vlgmr.msra.gmra.mxu1 %v370_v7  ;;  %v3264_v6 = vld [vmem:[%s4054_s1 + $0x190] sm:$0xff] }
  0x2d   : > { %580 = vmatmul.bf16.vlgmr.msra.gmra.mxu2 %v511_v9  ;;  %862 = vmatpush.bf16.msrb.mxu0 %v3261_v41  ;;  %v3255_v9 = vld [vmem:[%s4054_s1 + $0x148] sm:$0xff] }
  0x2e   : > { %679 = vmatmul.bf16.vlgmr.msra.gmra.mxu3 %v3396_v10  ;;  %1100 = vmatpush.bf16.msrb.mxu2 %v3269_v38 }
  0x2f   : > { %1199 = vmatpush.bf16.msrb.mxu3 %v3277_v33  ;;  %962 = vmatpush.bf16.msrb.mxu1 %v3253_v42 }
  0x31   : > { %863 = vmatpush.bf16.msrb.mxu0 %v3260_v45 }
  0x32   : > { %1101 = vmatpush.bf16.msrb.mxu2 %v3268_v43 }
  0x33   : > { %1200 = vmatpush.bf16.msrb.mxu3 %v3276_v34  ;;  %963 = vmatpush.bf16.msrb.mxu1 %v3252_v46 }
  0x35   : > { %864 = vmatpush.bf16.msrb.mxu0 %v3259_v47 }
  0x37   : > { %1201 = vmatpush.bf16.msrb.mxu3 %v3275_v35  ;;  %964 = vmatpush.bf16.msrb.mxu1 %v3251_v51 }
  0x39   : > { %865 = vmatpush.bf16.msrb.mxu0 %v3258_v53 }
  0x3b   : > { %1202 = vmatpush.bf16.msrb.mxu3 %v3274_v36  ;;  %965 = vmatpush.bf16.msrb.mxu1 %v3250_v55 }
  0x3c   : > { %345 = vmatmul.bf16.gmra.mxu0 %v280_v27  ;;  %446 = vmatmul.bf16.gmra.mxu1 %v378_v28 }
  0x3d   : > { %585 = vmatmul.bf16.gmra.mxu2 %v520_v29  ;;  %866 = vmatpush.bf16.msrb.mxu0 %v3257_v58  ;;  %v3417_v58 = vld [vmem:[#allocation2 + $0x4] sm:$0x8] }
  0x3e   : > { %684 = vmatmul.bf16.gmra.mxu3 %v3612_v50  ;;  %v3267_v50 = vld [vmem:[%s4054_s1 + $0x1a8] sm:$0xff] }
  0x3f   : > { %1203 = vmatpush.bf16.msrb.mxu3 %v3273_v37  ;;  %1102 = vmatpush.bf16.msrb.mxu2 %v3267_v50 }
  0x40   : > { %966 = vmatpush.bf16.msrb.mxu1 %v3249_v62 }
  0x41   : > { %867 = vmatpush.bf16.msrb.mxu0 %v3256_v1 }
  0x43   : > { %1204 = vmatpush.bf16.msrb.mxu3 %v3272_v39  ;;  %1103 = vmatpush.bf16.msrb.mxu2 %v3266_v52 }
  0x44   : > { %967 = vmatpush.bf16.msrb.mxu1 %v3248_v4 }
  0x45   : > { %868 = vmatpush.bf16.msrb.mxu0 %v3255_v9 }
  0x47   : > { %1205 = vmatpush.bf16.msrb.mxu3 %v3271_v40  ;;  %1104 = vmatpush.bf16.msrb.mxu2 %v3265_v0 }
  0x48   : > { %968 = vmatpush.bf16.msrb.mxu1 %v3247_v14 }
  0x49   : > { %869 = vmatpush.bf16.msrb.mxu0 %v3254_v17 }
  0x4b   : > { %1206 = vmatpush.bf16.msrb.mxu3 %v3270_v44  ;;  %1105 = vmatpush.bf16.msrb.mxu2 %v3264_v6 }
  0x4c   : > { %350 = vmatmul.bf16.gmra.mxu0 %v279_v23  ;;  %451 = vmatmul.bf16.gmra.mxu1 %v381_v31  ;;  %v3262_v23 = vld [vmem:[%s4054_s1 + $0x180] sm:$0xff] }
  0x4d   : > { %590 = vmatmul.bf16.gmra.mxu2 %v519_v26  ;;  %969 = vmatpush.bf16.msrb.mxu1 %v3246_v21 }
  0x4e   : > { %689 = vmatmul.bf16.gmra.mxu3 %v619_v32 }
  0x4f   : > { %1106 = vmatpush.bf16.msrb.mxu2 %v3263_v16 }
  0x53   : > { %1107 = vmatpush.bf16.msrb.mxu2 %v3262_v23 }
  0x7a   : > { %v3766_v1 = vpop.permute.xlu2 %735 }
  0x89   : > { %v3714_v63 = vpop.permute.xlu0 %715 }
  0x8c   : > { %v3757_v33 = vpop.permute.xlu1 %725 }
  0x91   : > { %v3750_v22 = vpop.permute.xlu0 %720 }
  0xa9   : > { %v341_v48 = vpop.f32.mrf.mxu0  ;;  %v442_v49 = vpop.f32.mrf.mxu1 }
  0xaa   : > { %v443_v54 = vadd.f32 %v442_v49, %v341_v48  ;;  %v3761_v48 = vpop.permute.xlu1 %730 }
  0xb0   : > { %v581_v56 = vpop.f32.mrf.mxu2 }
  0xb1   : > { %v680_v57 = vpop.f32.mrf.mxu3  ;;  %v595_v59 = vadd.f32 %v581_v56, %v443_v54  ;;  %v343_v60 = vpop.f32.mrf.mxu0 }
  0xb2   : > { %v444_v61 = vpop.f32.mrf.mxu1 }
  0xb3   : > { %v694_v2 = vadd.f32 %v680_v57, %v595_v59  ;;  %v445_v5 = vadd.f32 %v444_v61, %v343_v60  ;;  %v3469_v57 = vld [vmem:[#allocation2 + $0x4] sm:$0xe] }
  0xb5   : > { %v703_v10 = vadd.f32 %v3725_v3, %v694_v2 }
  0xb7   : > { %v708_v18 = vmax.f32 %v703_v10, 0.0 }
  0xb8   : > { %v583_v7 = vpop.f32.mrf.mxu2 }
  0xb9   : > { %v682_v8 = vpop.f32.mrf.mxu3  ;;  %v596_v11 = vadd.f32 %v583_v7, %v445_v5  ;;  %v346_v12 = vpop.f32.mrf.mxu0  ;;  %v738_v27 = vmul.f32 %v3714_v63, %v708_v18 }
  0xba   : > { %v447_v13 = vpop.f32.mrf.mxu1 }
  0xbb   : > { %v695_v15 = vadd.f32 %v682_v8, %v596_v11  ;;  %v448_v20 = vadd.f32 %v447_v13, %v346_v12 }
  0xbd   : > { %v704_v19 = vadd.f32 %v3725_v3, %v695_v15 }
  0xbf   : > { %v709_v24 = vmax.f32 %v704_v19, 0.0 }
  0xc0   : > { %v586_v25 = vpop.f32.mrf.mxu2 }
  0xc1   : > { %v685_v26 = vpop.f32.mrf.mxu3  ;;  %v739_v28 = vmul.f32 %v3750_v22, %v709_v24  ;;  %v597_v29 = vadd.f32 %v586_v25, %v448_v20  ;;  %v348_v30 = vpop.f32.mrf.mxu0 }
  0xc2   : > { %v449_v31 = vpop.f32.mrf.mxu1 }
  0xc3   : > { %v3361_v32 = vpack.c.bf16 %v739_v28, %v738_v27  ;;  %v696_v34 = vadd.f32 %v685_v26, %v597_v29  ;;  %v450_v35 = vadd.f32 %v449_v31, %v348_v30 }
  0xc5   : > { %3398 = vst [vmem:[#allocation2 + $0x8] sm:$0xff] %v3361_v32   ;;  %1207 = vmatmul.bf16.vlgmr.msrb.gmra.mxu3 %v3361_v32  ;;  %v705_v38 = vadd.f32 %v3725_v3, %v696_v34 }
  0xc7   : > { %v710_v45 = vmax.f32 %v705_v38, 0.0 }
  0xc8   : > { %v588_v36 = vpop.f32.mrf.mxu2 }
  0xc9   : > { %v687_v37 = vpop.f32.mrf.mxu3  ;;  %v598_v39 = vadd.f32 %v588_v36, %v450_v35  ;;  %v351_v40 = vpop.f32.mrf.mxu0  ;;  %v740_v52 = vmul.f32 %v3757_v33, %v710_v45 }
  0xca   : > { %v452_v41 = vpop.f32.mrf.mxu1 }
  0xcb   : > { %v697_v42 = vadd.f32 %v687_v37, %v598_v39  ;;  %v453_v47 = vadd.f32 %v452_v41, %v351_v40 }
  0xcc   : > { %v754_v43 = vld [vmem:[#allocation2 + $0x4] sm:$0xff]  }
  0xcd   : > { %v3468_v44 = vld [vmem:[#allocation2 + $0x4] sm:$0xf0]  ;;  %v706_v46 = vadd.f32 %v3725_v3, %v697_v42  ;;  %v891_v4 = vshll.u32 %v754_v43, 16 }
  0xce   : > { %v3428_v59 = vld [vmem:[#allocation2 + $0x4] sm:$0xf0]   ;;  %v3470_v8 = vor.u32 %v3469_v57, %v3468_v44  ;;  %v3287_v57 = vld [vmem:[%s4054_s1 + $0x238] sm:$0xff] }
  0xcf   : > { %v711_v49 = vmax.f32 %v706_v46, 0.0  ;;  %v3418_v0 = vor.u32 %v3428_v59, %v3417_v58  ;;  %v893_v12 = vrot.slane %v891_v4, 1  ;;  %1461 = vmatpush.bf16.msra.mxu1 %v3287_v57  ;;  %v3286_v59 = vld [vmem:[%s4054_s1 + $0x230] sm:$0xff]  ;;  %v3283_v4 = vld [vmem:[%s4054_s1 + $0x218] sm:$0xff] }
  0xd0   : > { %v591_v50 = vpop.f32.mrf.mxu2  ;;  %v806_v15 = vrot.slane %v3470_v8, 1  ;;  %v3304_v8 = vld [vmem:[%s4054_s1 + $0x2b0] sm:$0xff] }
  0xd1   : > { %v690_v51 = vpop.f32.mrf.mxu3  ;;  %v741_v53 = vmul.f32 %v3761_v48, %v711_v49  ;;  %v599_v54 = vadd.f32 %v591_v50, %v453_v47  ;;  %v353_v55 = vpop.f32.mrf.mxu0  ;;  %v1024_v9 = vshrl.u32 %v3418_v0, 16  ;;  %v1027_v10 = vshll.u32 %v3418_v0, 16  ;;  %v3313_v0 = vld [vmem:[%s4054_s1 + $0x2f8] sm:$0xff] }
  0xd2   : > { %v454_v56 = vpop.f32.mrf.mxu1  ;;  %1705 = vmatpush.bf16.msra.mxu3 %v3313_v0 }
  0xd3   : > { %v3366_v60 = vpack.c.bf16 %v741_v53, %v740_v52  ;;  %v698_v61 = vadd.f32 %v690_v51, %v599_v54  ;;  %v1026_v16 = vrot.slane %v1024_v9, 3  ;;  %v1029_v17 = vrot.slane %v1027_v10, 4  ;;  %1462 = vmatpush.bf16.msra.mxu1 %v3286_v59  ;;  %v3312_v9 = vld [vmem:[%s4054_s1 + $0x2f0] sm:$0xff] }
  0xd4   : > { %v3294_v10 = vld [vmem:[%s4054_s1 + $0x270] sm:$0xff] }
  0xd5   : > { %3399 = vst [vmem:[#allocation2 + $0x10] sm:$0xff] %v3366_v60   ;;  %v707_v62 = vadd.f32 %v3725_v3, %v698_v61  ;;  %1212 = vmatmul.bf16.gmra.mxu3 %v3366_v60  ;;  %v889_v3 = vshrl.u32 %v754_v43, 16  ;;  %v1030_v30 = vor.u32 %v1029_v17, %v1026_v16  ;;  %v3375_v36 = vunpack.c.h.b16 %v3366_v60  ;;  %v3285_v60 = vld [vmem:[%s4054_s1 + $0x228] sm:$0xff]  ;;  %v3280_v16 = vld [vmem:[%s4054_s1 + $0x200] sm:$0xff] }
  0xd6   : > { %1706 = vmatpush.bf16.msra.mxu3 %v3312_v9  ;;  %v3302_v17 = vld [vmem:[%s4054_s1 + $0x2a0] sm:$0xff] }
  0xd7   : > { %v712_v2 = vmax.f32 %v707_v62, 0.0  ;;  %v894_v23 = vor.u32 %v893_v12, %v889_v3  ;;  %1463 = vmatpush.bf16.msra.mxu1 %v3285_v60  ;;  %v3305_v62 = vld [vmem:[%s4054_s1 + $0x2b8] sm:$0xff]  ;;  %v3281_v12 = vld [vmem:[%s4054_s1 + $0x208] sm:$0xff] }
  0xd8   : > { %v593_v5 = vpop.f32.mrf.mxu2  ;;  %1579 = vmatpush.bf16.msra.mxu2 %v3305_v62  ;;  %v3293_v3 = vld [vmem:[%s4054_s1 + $0x268] sm:$0xff] }
  0xd9   : > { %v692_v6 = vpop.f32.mrf.mxu3  ;;  %v742_v7 = vmul.f32 %v3766_v1, %v712_v2  ;;  %v3284_v2 = vld [vmem:[%s4054_s1 + $0x220] sm:$0xff] }
  0xda   : > { %v3282_v6 = vld [vmem:[%s4054_s1 + $0x210] sm:$0xff] }
  0xdb   : > { %v747_v11 = vpack.c.bf16 %v742_v7, %v742_v7  ;;  %1464 = vmatpush.bf16.msra.mxu1 %v3284_v2  ;;  %v3295_v7 = vld [vmem:[%s4054_s1 + $0x278] sm:$0xff] }
  0xdc   : > { %v3245_v13 = vld [vmem:[#allocation2 + $0xc] sm:$0xff]  ;;  %v757_v24 = vld [vmem:[#allocation2 + $0x14] sm:$0x7]  ;;  %1384 = vmatpush.bf16.msra.mxu0 %v3295_v7  ;;  %1580 = vmatpush.bf16.msra.mxu2 %v3304_v8 }
  0xdd   : > { %v3429_v14 = vld [vmem:[#allocation2 + $0xc] sm:$0xff]   ;;  %752 = vst [vmem:[#allocation2 + $0x18] sm:$0x3] %v747_v11  ;;  %v807_v18 = vrot.slane %v3245_v13, 1  ;;  %v896_v19 = vshll.u32 %v3245_v13, 16  ;;  %v802_v32 = vunpack.c.l.b16 %v757_v24  ;;  %v900_v45 = vshrl.u32 %v3245_v13, 16 }
  0xde   : > { %v1032_v20 = vshrl.u32 %v3429_v14, 16  ;;  %v1035_v21 = vshll.u32 %v3429_v14, 16  ;;  %v3303_v14 = vld [vmem:[%s4054_s1 + $0x2a8] sm:$0xff] }
  0xdf   : > { %v808_v25 = vsel %vm275_vm0, %v806_v15, %v807_v18  ;;  %v898_v26 = vrot.slane %v896_v19, 1  ;;  %v805_v38 = vpack.c.b16 %v802_v32, %v802_v32  ;;  %1465 = vmatpush.bf16.msra.mxu1 %v3283_v4  ;;  %v3311_v15 = vld [vmem:[%s4054_s1 + $0x2e8] sm:$0xff]  ;;  %v3309_v32 = vld [vmem:[%s4054_s1 + $0x2d8] sm:$0xff] }
  0xe0   : > { %v1034_v27 = vrot.slane %v1032_v20, 3  ;;  %v1037_v28 = vrot.slane %v1035_v21, 4  ;;  %870 = vmatmul.bf16.vlgmr.msrb.gmra.mxu0 %v808_v25  ;;  %1581 = vmatpush.bf16.msra.mxu2 %v3303_v14  ;;  %v3292_v21 = vld [vmem:[%s4054_s1 + $0x260] sm:$0xff] }
  0xe1   : > { %v899_v29 = vsel %vm358_vm1, %v894_v23, %v898_v26  ;;  %v904_v43 = vshll.u32 %v805_v38, 16  ;;  %v809_v44 = vrot.slane %v805_v38, 1  ;;  %v902_v49 = vor.u32 %v900_v45, %v898_v26  ;;  %1385 = vmatpush.bf16.msra.mxu0 %v3294_v10  ;;  %1707 = vmatpush.bf16.msra.mxu3 %v3311_v15  ;;  %v3310_v26 = vld [vmem:[%s4054_s1 + $0x2e0] sm:$0xff]  ;;  %v3289_v45 = vld [vmem:[%s4054_s1 + $0x248] sm:$0xff] }
  0xe2   : > { %v1038_v31 = vor.u32 %v1037_v28, %v1034_v27  ;;  %970 = vmatmul.bf16.vlgmr.msrb.gmra.mxu1 %v899_v29  ;;  %v908_v55 = vshrl.u32 %v805_v38, 16  ;;  %v3301_v27 = vld [vmem:[%s4054_s1 + $0x298] sm:$0xff] }
  0xe3   : > { %v906_v50 = vrot.slane %v904_v43, 1  ;;  %v810_v51 = vsel %vm275_vm0, %v807_v18, %v809_v44  ;;  %1466 = vmatpush.bf16.msra.mxu1 %v3282_v6  ;;  %v3291_v28 = vld [vmem:[%s4054_s1 + $0x258] sm:$0xff]  ;;  %v3299_v43 = vld [vmem:[%s4054_s1 + $0x288] sm:$0xff] }
  0xe4   : > { %v1039_v34 = vsel %vm494_vm2, %v1030_v30, %v1038_v31  ;;  %v990_v35 = vld [vmem:[#allocation2 + $0x18] sm:$0x3]  ;;  %1582 = vmatpush.bf16.msra.mxu2 %v3302_v17 }
  0xe5   : > { %1108 = vmatmul.bf16.vlgmr.msrb.gmra.mxu2 %v1039_v34  ;;  %v1019_v37 = vunpack.c.l.b16 %v990_v35  ;;  %v907_v53 = vsel %vm358_vm1, %v902_v49, %v906_v50  ;;  %v910_v56 = vor.u32 %v908_v55, %v906_v50  ;;  %1386 = vmatpush.bf16.msra.mxu0 %v3293_v3  ;;  %v3300_v34 = vld [vmem:[%s4054_s1 + $0x290] sm:$0xff]  ;;  %v3307_v50 = vld [vmem:[%s4054_s1 + $0x2c8] sm:$0xff] }
  0xe6   : > { %1708 = vmatpush.bf16.msra.mxu3 %v3310_v26 }
  0xe7   : > { %v1022_v39 = vpack.c.b16 %v1019_v37, %v3375_v36  ;;  %v1147_v40 = vpack.c.b16 %v1019_v37, %v1019_v37  ;;  %1467 = vmatpush.bf16.msra.mxu1 %v3281_v12  ;;  %v3290_v37 = vld [vmem:[%s4054_s1 + $0x250] sm:$0xff] }
  0xe8   : > { %1583 = vmatpush.bf16.msra.mxu2 %v3301_v27 }
  0xe9   : > { %1217 = vmatmul.bf16.gmra.mxu3 %v1147_v40  ;;  %v1041_v41 = vshrl.u32 %v1022_v39, 16  ;;  %v1044_v42 = vshll.u32 %v1022_v39, 16  ;;  %1387 = vmatpush.bf16.msra.mxu0 %v3292_v21 }
  0xea   : > { %1709 = vmatpush.bf16.msra.mxu3 %v3309_v32 }
  0xeb   : > { %v1043_v46 = vrot.slane %v1041_v41, 3  ;;  %v1046_v47 = vrot.slane %v1044_v42, 4  ;;  %1468 = vmatpush.bf16.msra.mxu1 %v3280_v16  ;;  %v3308_v42 = vld [vmem:[%s4054_s1 + $0x2d0] sm:$0xff] }
  0xec   : > { %1584 = vmatpush.bf16.msra.mxu2 %v3300_v34 }
  0xed   : > { %v1047_v52 = vor.u32 %v1046_v47, %v1043_v46  ;;  %1388 = vmatpush.bf16.msra.mxu0 %v3291_v28 }
  0xee   : > { %1710 = vmatpush.bf16.msra.mxu3 %v3308_v42 }
  0xef   : > { %v1048_v54 = vsel %vm494_vm2, %v1038_v31, %v1047_v52  ;;  %v3852_v31 = vld [vmem:[%s4055_s2 + $0x1] ss:$0 sm:$0xff] }
  0xf0   : > { %875 = vmatmul.bf16.gmra.mxu0 %v810_v51  ;;  %1585 = vmatpush.bf16.msra.mxu2 %v3299_v43  ;;  %v3298_v51 = vld [vmem:[%s4054_s1 + $0x280] sm:$0xff] }
  0xf1   : > { %1389 = vmatpush.bf16.msra.mxu0 %v3290_v37 }
  0xf2   : > { %975 = vmatmul.bf16.gmra.mxu1 %v907_v53  ;;  %v3288_v53 = vld [vmem:[%s4054_s1 + $0x240] sm:$0xff]  ;;  %1711 = vmatpush.bf16.msra.mxu3 %v3307_v50 }
  0xf4   : > { %1586 = vmatpush.bf16.msra.mxu2 %v3298_v51 }
  0xf5   : > { %1113 = vmatmul.bf16.gmra.mxu2 %v1048_v54  ;;  %1390 = vmatpush.bf16.msra.mxu0 %v3289_v45 }
  0xf9   : > { %1391 = vmatpush.bf16.msra.mxu0 %v3288_v53  ;;  %v1489_v53 = vld [vmem:[#allocation2 + $0x1c] sm:$0x1] }
 0x100   : > { %880 = vmatmul.bf16.gmra.mxu0 %v809_v44 }
 0x102   : > { %980 = vmatmul.bf16.gmra.mxu1 %v910_v56  ;;  %v3306_v56 = vld [vmem:[%s4054_s1 + $0x2c0] sm:$0xff] }
 0x103   : > { %1712 = vmatpush.bf16.msra.mxu3 %v3306_v56 }
 0x105   : > { %1118 = vmatmul.bf16.gmra.mxu2 %v1047_v52 }
 0x148   : > { %v1208_v58 = vpop.f32.mrf.mxu3 }
 0x150   : > { %v3784_v61 = vpop.f32.mrf.mxu3 }
 0x158   : > { %v3798_v5 = vpop.f32.mrf.mxu3 }
 0x15d   : > { %v871_v11 = vpop.f32.mrf.mxu0 }
 0x15f   : > { %v971_v13 = vpop.f32.mrf.mxu1 }
 0x160   : > { %v3833_v18 = vpop.f32.mrf.mxu3  ;;  %v972_v20 = vadd.f32 %v971_v13, %v871_v11 }
 0x165   : > { %v873_v19 = vpop.f32.mrf.mxu0 }
 0x167   : > { %v973_v23 = vpop.f32.mrf.mxu1 }
 0x168   : > { %v1109_v24 = vpop.f32.mrf.mxu2  ;;  %v974_v36 = vadd.f32 %v973_v23, %v873_v19 }
 0x169   : > { %v1123_v25 = vadd.f32 %v1109_v24, %v972_v20 }
 0x16b   : > { %v1222_v30 = vadd.f32 %v1208_v58, %v1123_v25 }
 0x16c   : > { %v3847_v29 = vpop.f32.mrf.mxu3 }
 0x16d   : > { %v876_v35 = vpop.f32.mrf.mxu0  ;;  %v1232_v40 = vadd.f32 %v3852_v31, %v1222_v30 }
 0x16f   : > { %v976_v38 = vpop.f32.mrf.mxu1  ;;  %v1237_v47 = vmax.f32 %v1232_v40, 0.0 }
 0x170   : > { %v1111_v39 = vpop.f32.mrf.mxu2  ;;  %v977_v54 = vadd.f32 %v976_v38, %v876_v35 }
 0x171   : > { %v1124_v41 = vadd.f32 %v1111_v39, %v974_v36  ;;  %v1242_v59 = vmul.f32 %v1237_v47, %v3714_v63 }
 0x173   : > { %v1223_v44 = vadd.f32 %v3784_v61, %v1124_v41 }
 0x174   : > { %v1220_v46 = vpop.f32.mrf.mxu3 }
 0x175   : > { %v1233_v49 = vadd.f32 %v3852_v31, %v1223_v44  ;;  %v878_v52 = vpop.f32.mrf.mxu0 }
 0x177   : > { %v1238_v55 = vmax.f32 %v1233_v49, 0.0  ;;  %v978_v57 = vpop.f32.mrf.mxu1 }
 0x178   : > { %v1114_v58 = vpop.f32.mrf.mxu2  ;;  %v979_v4 = vadd.f32 %v978_v57, %v878_v52  ;;  %v1607_v52 = vld [vmem:[#allocation2 + $0x1c] sm:$0x3] }
 0x179   : > { %v1243_v60 = vmul.f32 %v1238_v55, %v3750_v22  ;;  %v1125_v61 = vadd.f32 %v1114_v58, %v977_v54  ;;  %v1626_v57 = vunpack.c.l.b16 %v1607_v52 }
 0x17b   : > { %v3379_v62 = vpack.c.bf16 %v1243_v60, %v1242_v59  ;;  %v1224_v0 = vadd.f32 %v3798_v5, %v1125_v61  ;;  %v1518_v60 = vunpack.c.l.b16 %v1489_v53  ;;  %v3337_v53 = vld [vmem:[%s4054_s1 + $0x398] sm:$0xff] }
 0x17d   : > { %3402 = vst [vmem:[#allocation2 + $0x8] sm:$0xff] %v3379_v62   ;;  %v881_v2 = vpop.f32.mrf.mxu0  ;;  %v1234_v8 = vadd.f32 %v3852_v31, %v1224_v0 }
 0x17f   : > { %v981_v6 = vpop.f32.mrf.mxu1  ;;  %v1239_v12 = vmax.f32 %v1234_v8, 0.0 }
 0x180   : > { %v1116_v7 = vpop.f32.mrf.mxu2  ;;  %v982_v15 = vadd.f32 %v981_v6, %v881_v2 }
 0x181   : > { %v1126_v9 = vadd.f32 %v1116_v7, %v979_v4  ;;  %v1244_v5 = vmul.f32 %v1239_v12, %v3757_v33 }
 0x183   : > { %v1225_v10 = vadd.f32 %v3833_v18, %v1126_v9 }
 0x184   : > { %v3278_v11 = vld [vmem:[#allocation2 + $0x8] sm:$0xff] }
 0x185   : > { %v1235_v13 = vadd.f32 %v3852_v31, %v1225_v10  ;;  %v883_v14 = vpop.f32.mrf.mxu0  ;;  %1469 = vmatmul.bf16.vlgmr.msra.gmra.mxu1 %v3278_v11  ;;  %v2914_v21 = vld [vmem:[#allocation2 + $0x8] sm:$0x8]  ;;  %v3296_v23 = vld [vmem:[#allocation2 + $0x8] sm:$0xf0]  ;;  %v1313_v28 = vshll.u32 %v3278_v11, 16  ;;  %v1311_v41 = vshrl.u32 %v3278_v11, 16 }
 0x186   : > { %v2915_v26 = vor.u32 %v3296_v23, %v2914_v21 }
 0x187   : > { %v1240_v3 = vmax.f32 %v1235_v13, 0.0  ;;  %v983_v16 = vpop.f32.mrf.mxu1  ;;  %v1315_v37 = vrot.slane %v1313_v28, 1  ;;  %v3341_v28 = vld [vmem:[%s4054_s1 + $0x3b8] sm:$0xff] }
 0x188   : > { %v1119_v17 = vpop.f32.mrf.mxu2  ;;  %v1629_v34 = vshrl.u32 %v2915_v26, 16  ;;  %v1632_v35 = vshll.u32 %v2915_v26, 16  ;;  %v1523_v40 = vrot.slane %v2915_v26, 3  ;;  %2084 = vmatpush.bf16.msrb.mxu2 %v3341_v28 }
 0x189   : > { %v1245_v19 = vmul.f32 %v1240_v3, %v3761_v48  ;;  %v1127_v20 = vadd.f32 %v1119_v17, %v982_v15  ;;  %v1316_v46 = vor.u32 %v1315_v37, %v1311_v41  ;;  %v3318_v37 = vld [vmem:[%s4054_s1 + $0x310] sm:$0xff] }
 0x18a   : > { %v1634_v42 = vrot.slane %v1632_v35, 4  ;;  %v3330_v41 = vld [vmem:[%s4054_s1 + $0x370] sm:$0xff] }
 0x18b   : > { %v3384_v24 = vpack.c.bf16 %v1245_v19, %v1244_v5  ;;  %v1226_v18 = vadd.f32 %v3847_v29, %v1127_v20  ;;  %v1631_v29 = vrot.slane %v1629_v34, 3  ;;  %v3320_v34 = vld [vmem:[%s4054_s1 + $0x320] sm:$0xff] }
 0x18d   : > { %3403 = vst [vmem:[#allocation2 + $0x10] sm:$0xff] %v3384_v24   ;;  %v1236_v25 = vadd.f32 %v3852_v31, %v1226_v18  ;;  %v1635_v55 = vor.u32 %v1634_v42, %v1631_v29  ;;  %v3323_v18 = vld [vmem:[%s4054_s1 + $0x338] sm:$0xff]  ;;  %v3317_v29 = vld [vmem:[%s4054_s1 + $0x308] sm:$0xff] }
 0x18e   : > { %1967 = vmatpush.bf16.msrb.mxu1 %v3323_v18  ;;  %v3339_v42 = vld [vmem:[%s4054_s1 + $0x3a8] sm:$0xff] }
 0x18f   : > { %v1241_v27 = vmax.f32 %v1236_v25, 0.0  ;;  %v3322_v25 = vld [vmem:[%s4054_s1 + $0x330] sm:$0xff] }
 0x190   : > { %v1121_v30 = vpop.f32.mrf.mxu2 }
 0x191   : > { %v1246_v32 = vmul.f32 %v1241_v27, %v3766_v1  ;;  %v3321_v27 = vld [vmem:[%s4054_s1 + $0x328] sm:$0xff]  ;;  %v3349_v30 = vld [vmem:[%s4054_s1 + $0x3f8] sm:$0xff] }
 0x192   : > { %1968 = vmatpush.bf16.msrb.mxu1 %v3322_v25  ;;  %2210 = vmatpush.bf16.msrb.mxu3 %v3349_v30 }
 0x193   : > { %v1251_v36 = vpack.c.bf16 %v1246_v32, %v1246_v32  ;;  %v3331_v32 = vld [vmem:[%s4054_s1 + $0x378] sm:$0xff] }
 0x194   : > { %v3279_v38 = vld [vmem:[#allocation2 + $0x10] sm:$0xff]  ;;  %1890 = vmatpush.bf16.msrb.mxu0 %v3331_v32 }
 0x195   : > { %v3297_v39 = vld [vmem:[#allocation2 + $0x10] sm:$0xff]  ;;  %1256 = vst [vmem:[#allocation2 + $0x18] sm:$0x3] %v1251_v36  ;;  %1474 = vmatmul.bf16.gmra.mxu1 %v3279_v38  ;;  %v1318_v43 = vshll.u32 %v3279_v38, 16  ;;  %v1322_v3 = vshrl.u32 %v3279_v38, 16  ;;  %v3319_v36 = vld [vmem:[%s4054_s1 + $0x318] sm:$0xff] }
 0x196   : > { %v1524_v31 = vrot.slane %v3297_v39, 3  ;;  %v1637_v44 = vshrl.u32 %v3297_v39, 16  ;;  %v1640_v45 = vshll.u32 %v3297_v39, 16  ;;  %1969 = vmatpush.bf16.msrb.mxu1 %v3321_v27  ;;  %v3340_v39 = vld [vmem:[%s4054_s1 + $0x3b0] sm:$0xff] }
 0x197   : > { %v1320_v49 = vrot.slane %v1318_v43, 1  ;;  %2085 = vmatpush.bf16.msrb.mxu2 %v3340_v39  ;;  %v3329_v43 = vld [vmem:[%s4054_s1 + $0x368] sm:$0xff] }
 0x198   : > { %v1525_v47 = vsel %vm1522_vm3, %v1523_v40, %v1524_v31  ;;  %v1639_v50 = vrot.slane %v1637_v44, 3  ;;  %v1642_v51 = vrot.slane %v1640_v45, 4  ;;  %v3348_v40 = vld [vmem:[%s4054_s1 + $0x3f0] sm:$0xff]  ;;  %1891 = vmatpush.bf16.msrb.mxu0 %v3330_v41  ;;  %v3316_v45 = vld [vmem:[%s4054_s1 + $0x300] sm:$0xff] }
 0x199   : > { %1587 = vmatmul.bf16.vlgmr.msra.gmra.mxu2 %v1525_v47  ;;  %v1321_v54 = vsel %vm358_vm1, %v1316_v46, %v1320_v49  ;;  %v1324_v5 = vor.u32 %v1322_v3, %v1320_v49  ;;  %2211 = vmatpush.bf16.msrb.mxu3 %v3348_v40  ;;  %v3338_v46 = vld [vmem:[%s4054_s1 + $0x3a0] sm:$0xff] }
 0x19a   : > { %v1643_v56 = vor.u32 %v1642_v51, %v1639_v50  ;;  %1392 = vmatmul.bf16.vlgmr.msra.gmra.mxu0 %v1321_v54  ;;  %1970 = vmatpush.bf16.msrb.mxu1 %v3320_v34  ;;  %v3346_v47 = vld [vmem:[%s4054_s1 + $0x3e0] sm:$0xff] }
 0x19b   : > { %2086 = vmatpush.bf16.msrb.mxu2 %v3339_v42  ;;  %v3328_v51 = vld [vmem:[%s4054_s1 + $0x360] sm:$0xff] }
 0x19c   : > { %v1644_v58 = vsel %vm494_vm2, %v1635_v55, %v1643_v56  ;;  %v1488_v59 = vld [vmem:[#allocation2 + $0x18] sm:$0xf]  ;;  %1892 = vmatpush.bf16.msrb.mxu0 %v3329_v43 }
 0x19d   : > { %v1279_v61 = vld [vmem:[#allocation2 + $0x18] sm:$0x7]  ;;  %1713 = vmatmul.bf16.vlgmr.msra.gmra.mxu3 %v1644_v58  ;;  %v1517_v0 = vunpack.c.l.b16 %v1488_v59  ;;  %v3975_v59 = vld [vmem:[%s4055_s2 + $0x2] ss:$0 sm:$0xff] }
 0x19e   : > { %v1261_v62 = vld [vmem:[#allocation2 + $0x18] sm:$0x3]  ;;  %v1306_v2 = vunpack.c.l.b16 %v1279_v61  ;;  %1971 = vmatpush.bf16.msrb.mxu1 %v3319_v36 }
 0x19f   : > { %v1627_v6 = vpack.c.b16 %v1626_v57, %v1517_v0  ;;  %v1408_v7 = vunpack.c.l.b16 %v1261_v62  ;;  %v1521_v8 = vpack.c.b16 %v1518_v60, %v1517_v0  ;;  %2087 = vmatpush.bf16.msrb.mxu2 %v3338_v46  ;;  %v3327_v57 = vld [vmem:[%s4054_s1 + $0x358] sm:$0xff]  ;;  %v3336_v62 = vld [vmem:[%s4054_s1 + $0x390] sm:$0xff] }
 0x1a0   : > { %v1309_v4 = vpack.c.b16 %v1306_v2, %v1306_v2  ;;  %1893 = vmatpush.bf16.msrb.mxu0 %v3328_v51  ;;  %v3345_v61 = vld [vmem:[%s4054_s1 + $0x3d8] sm:$0xff] }
 0x1a1   : > { %v1646_v9 = vshrl.u32 %v1627_v6, 16  ;;  %v1649_v10 = vshll.u32 %v1627_v6, 16  ;;  %v1409_v12 = vpack.c.b16 %v1408_v7, %v1408_v7  ;;  %v1526_v13 = vrot.slane %v1521_v8, 3  ;;  %v3344_v8 = vld [vmem:[%s4054_s1 + $0x3d0] sm:$0xff] }
 0x1a2   : > { %v1326_v11 = vshll.u32 %v1309_v4, 16  ;;  %v1330_v23 = vshrl.u32 %v1309_v4, 16  ;;  %1972 = vmatpush.bf16.msrb.mxu1 %v3318_v37  ;;  %v3326_v4 = vld [vmem:[%s4054_s1 + $0x350] sm:$0xff] }
 0x1a3   : > { %v1648_v14 = vrot.slane %v1646_v9, 3  ;;  %v1651_v15 = vrot.slane %v1649_v10, 4  ;;  %v1527_v17 = vsel %vm1522_vm3, %v1524_v31, %v1526_v13  ;;  %v3347_v31 = vld [vmem:[%s4054_s1 + $0x3e8] sm:$0xff]  ;;  %2088 = vmatpush.bf16.msrb.mxu2 %v3337_v53 }
 0x1a4   : > { %v1328_v16 = vrot.slane %v1326_v11, 1  ;;  %2212 = vmatpush.bf16.msrb.mxu3 %v3347_v31  ;;  %1894 = vmatpush.bf16.msrb.mxu0 %v3327_v57  ;;  %v3335_v9 = vld [vmem:[%s4054_s1 + $0x388] sm:$0xff] }
 0x1a5   : > { %1479 = vmatmul.bf16.gmra.mxu1 %v1409_v12  ;;  %v1652_v19 = vor.u32 %v1651_v15, %v1648_v14 }
 0x1a6   : > { %v1329_v20 = vsel %vm358_vm1, %v1324_v5, %v1328_v16  ;;  %v1332_v24 = vor.u32 %v1330_v23, %v1328_v16  ;;  %1973 = vmatpush.bf16.msrb.mxu1 %v3317_v29  ;;  %v3343_v16 = vld [vmem:[%s4054_s1 + $0x3c8] sm:$0xff] }
 0x1a7   : > { %v1653_v21 = vsel %vm494_vm2, %v1643_v56, %v1652_v19  ;;  %2089 = vmatpush.bf16.msrb.mxu2 %v3336_v62 }
 0x1a8   : > { %2213 = vmatpush.bf16.msrb.mxu3 %v3346_v47  ;;  %1895 = vmatpush.bf16.msrb.mxu0 %v3326_v4 }
 0x1a9   : > { %1592 = vmatmul.bf16.gmra.mxu2 %v1527_v17  ;;  %v3334_v17 = vld [vmem:[%s4054_s1 + $0x380] sm:$0xff] }
 0x1aa   : > { %1397 = vmatmul.bf16.gmra.mxu0 %v1329_v20  ;;  %1974 = vmatpush.bf16.msrb.mxu1 %v3316_v45 }
 0x1ab   : > { %2090 = vmatpush.bf16.msrb.mxu2 %v3335_v9 }
 0x1ac   : > { %2214 = vmatpush.bf16.msrb.mxu3 %v3345_v61 }
 0x1ad   : > { %1718 = vmatmul.bf16.gmra.mxu3 %v1653_v21  ;;  %v3342_v21 = vld [vmem:[%s4054_s1 + $0x3c0] sm:$0xff] }
 0x1af   : > { %2091 = vmatpush.bf16.msrb.mxu2 %v3334_v17 }
 0x1b0   : > { %2215 = vmatpush.bf16.msrb.mxu3 %v3344_v8 }
 0x1b4   : > { %2216 = vmatpush.bf16.msrb.mxu3 %v3343_v16 }
 0x1b8   : > { %2217 = vmatpush.bf16.msrb.mxu3 %v3342_v21 }
 0x1b9   : > { %1597 = vmatmul.bf16.gmra.mxu2 %v1526_v13  ;;  %v3325_v13 = vld [vmem:[%s4054_s1 + $0x348] sm:$0xff] }
 0x1ba   : > { %1402 = vmatmul.bf16.gmra.mxu0 %v1332_v24 }
 0x1bb   : > { %1896 = vmatpush.bf16.msrb.mxu0 %v3325_v13 }
 0x1bd   : > { %1723 = vmatmul.bf16.gmra.mxu3 %v1652_v19  ;;  %v3324_v19 = vld [vmem:[%s4054_s1 + $0x340] sm:$0xff] }
 0x1bf   : > { %1897 = vmatpush.bf16.msrb.mxu0 %v3324_v19  ;;  %v2112_v19 = vld [vmem:[#allocation2 + $0x1c] sm:$0x3] }
 0x202   : > { %v1470_v26 = vpop.f32.mrf.mxu1 }
 0x20a   : > { %v1472_v35 = vpop.f32.mrf.mxu1 }
 0x212   : > { %v3931_v38 = vpop.f32.mrf.mxu1 }
 0x217   : > { %v1393_v44 = vpop.f32.mrf.mxu0 }
 0x218   : > { %v1471_v52 = vadd.f32 %v1470_v26, %v1393_v44 }
 0x21a   : > { %v1477_v49 = vpop.f32.mrf.mxu1 }
 0x21c   : > { %v1588_v50 = vpop.f32.mrf.mxu2 }
 0x21d   : > { %v1602_v56 = vadd.f32 %v1588_v50, %v1471_v52 }
 0x21f   : > { %v1395_v54 = vpop.f32.mrf.mxu0 }
 0x220   : > { %v1714_v55 = vpop.f32.mrf.mxu3  ;;  %v1473_v2 = vadd.f32 %v1472_v35, %v1395_v54 }
 0x221   : > { %v1728_v58 = vadd.f32 %v1714_v55, %v1602_v56 }
 0x222   : > { %v1480_v60 = vpop.f32.mrf.mxu1 }
 0x223   : > { %v1738_v6 = vadd.f32 %v3975_v59, %v1728_v58 }
 0x224   : > { %v1590_v0 = vpop.f32.mrf.mxu2 }
 0x225   : > { %v1603_v7 = vadd.f32 %v1590_v0, %v1473_v2  ;;  %v1743_v14 = vmax.f32 %v1738_v6, 0.0 }
 0x227   : > { %v1398_v10 = vpop.f32.mrf.mxu0  ;;  %v1748_v23 = vmul.f32 %v1743_v14, %v3714_v63 }
 0x228   : > { %v1716_v11 = vpop.f32.mrf.mxu3  ;;  %v1476_v24 = vadd.f32 %v3931_v38, %v1398_v10 }
 0x229   : > { %v1729_v12 = vadd.f32 %v1716_v11, %v1603_v7 }
 0x22a   : > { %v1482_v3 = vpop.f32.mrf.mxu1 }
 0x22b   : > { %v1739_v15 = vadd.f32 %v3975_v59, %v1729_v12 }
 0x22c   : > { %v1593_v5 = vpop.f32.mrf.mxu2 }
 0x22d   : > { %v1744_v20 = vmax.f32 %v1739_v15, 0.0  ;;  %v1604_v28 = vadd.f32 %v1593_v5, %v1476_v24 }
 0x22f   : > { %v1749_v18 = vmul.f32 %v1744_v20, %v3750_v22  ;;  %v1400_v25 = vpop.f32.mrf.mxu0  ;;  %v1995_v20 = vld [vmem:[#allocation2 + $0x1c] sm:$0x1] }
 0x230   : > { %v1719_v26 = vpop.f32.mrf.mxu3  ;;  %v1478_v34 = vadd.f32 %v1477_v49, %v1400_v25 }
 0x231   : > { %v3389_v27 = vpack.c.bf16 %v1749_v18, %v1748_v23  ;;  %v1730_v30 = vadd.f32 %v1719_v26, %v1604_v28  ;;  %v2131_v18 = vunpack.c.l.b16 %v2112_v19 }
 0x233   : > { %3404 = vst [vmem:[#allocation2 + $0x8] sm:$0xff] %v3389_v27   ;;  %v1740_v35 = vadd.f32 %v3975_v59, %v1730_v30  ;;  %v2024_v27 = vunpack.c.l.b16 %v1995_v20 }
 0x234   : > { %v1595_v32 = vpop.f32.mrf.mxu2 }
 0x235   : > { %v1605_v36 = vadd.f32 %v1595_v32, %v1478_v34  ;;  %v1745_v38 = vmax.f32 %v1740_v35, 0.0 }
 0x237   : > { %v1403_v37 = vpop.f32.mrf.mxu0  ;;  %v1750_v44 = vmul.f32 %v1745_v38, %v3757_v33 }
 0x238   : > { %v1721_v39 = vpop.f32.mrf.mxu3  ;;  %v1481_v31 = vadd.f32 %v1480_v60, %v1403_v37 }
 0x239   : > { %v1731_v40 = vadd.f32 %v1721_v39, %v1605_v36 }
 0x23a   : > { %v3314_v41 = vld [vmem:[#allocation2 + $0x8] sm:$0xff] }
 0x23b   : > { %v1741_v29 = vadd.f32 %v3975_v59, %v1731_v40  ;;  %1975 = vmatmul.bf16.vlgmr.msrb.gmra.mxu1 %v3314_v41  ;;  %v3123_v50 = vld [vmem:[#allocation2 + $0x8] sm:$0x8]  ;;  %v3332_v51 = vld [vmem:[#allocation2 + $0x8] sm:$0xf0]  ;;  %v1819_v58 = vshll.u32 %v3314_v41, 16  ;;  %v1817_v9 = vshrl.u32 %v3314_v41, 16 }
 0x23c   : > { %v1598_v42 = vpop.f32.mrf.mxu2  ;;  %v3124_v55 = vor.u32 %v3332_v51, %v3123_v50 }
 0x23d   : > { %v1746_v43 = vmax.f32 %v1741_v29, 0.0  ;;  %v1606_v46 = vadd.f32 %v1598_v42, %v1481_v31  ;;  %v1821_v4 = vrot.slane %v1819_v58, 1 }
 0x23e   : > { %v2134_v61 = vshrl.u32 %v3124_v55, 16  ;;  %v2137_v62 = vshll.u32 %v3124_v55, 16  ;;  %v2028_v8 = vrot.slane %v3124_v55, 3 }
 0x23f   : > { %v1751_v45 = vmul.f32 %v1746_v43, %v3761_v48  ;;  %v1405_v47 = vpop.f32.mrf.mxu0  ;;  %v1822_v15 = vor.u32 %v1821_v4, %v1817_v9 }
 0x240   : > { %v1724_v49 = vpop.f32.mrf.mxu3  ;;  %v2136_v10 = vrot.slane %v2134_v61, 3  ;;  %v2139_v11 = vrot.slane %v2137_v62, 4 }
 0x241   : > { %v3394_v52 = vpack.c.bf16 %v1751_v45, %v1750_v44  ;;  %v1732_v53 = vadd.f32 %v1724_v49, %v1606_v46 }
 0x242   : > { %v2140_v23 = vor.u32 %v2139_v11, %v2136_v10 }
 0x243   : > { %3405 = vst [vmem:[#allocation2 + $0x10] sm:$0xff] %v3394_v52   ;;  %v1742_v54 = vadd.f32 %v3975_v59, %v1732_v53 }
 0x244   : > { %v1600_v56 = vpop.f32.mrf.mxu2 }
 0x245   : > { %v1747_v57 = vmax.f32 %v1742_v54, 0.0 }
 0x247   : > { %v1752_v60 = vmul.f32 %v1747_v57, %v3766_v1 }
 0x248   : > { %v1726_v0 = vpop.f32.mrf.mxu3 }
 0x249   : > { %v1757_v2 = vpack.c.bf16 %v1752_v60, %v1752_v60  ;;  %v4027_v0 = vld [vmem:[%s4055_s2 + $0x3] ss:$0 sm:$0xff] }
 0x24a   : > { %v3315_v6 = vld [vmem:[#allocation2 + $0x10] sm:$0xff] }
 0x24b   : > { %v3333_v7 = vld [vmem:[#allocation2 + $0x10] sm:$0xff]  ;;  %1762 = vst [vmem:[#allocation2 + $0x18] sm:$0x3] %v1757_v2  ;;  %1980 = vmatmul.bf16.gmra.mxu1 %v3315_v6  ;;  %v1824_v12 = vshll.u32 %v3315_v6, 16  ;;  %v1828_v44 = vshrl.u32 %v3315_v6, 16 }
 0x24c   : > { %v2029_v59 = vrot.slane %v3333_v7, 3  ;;  %v2142_v13 = vshrl.u32 %v3333_v7, 16  ;;  %v2145_v14 = vshll.u32 %v3333_v7, 16 }
 0x24d   : > { %v1826_v16 = vrot.slane %v1824_v12, 1 }
 0x24e   : > { %v2030_v3 = vsel %vm1522_vm3, %v2028_v8, %v2029_v59  ;;  %v2144_v17 = vrot.slane %v2142_v13, 3  ;;  %v2147_v5 = vrot.slane %v2145_v14, 4 }
 0x24f   : > { %2092 = vmatmul.bf16.vlgmr.msrb.gmra.mxu2 %v2030_v3  ;;  %v1827_v21 = vsel %vm358_vm1, %v1822_v15, %v1826_v16  ;;  %v1830_v47 = vor.u32 %v1828_v44, %v1826_v16 }
 0x250   : > { %v2148_v24 = vor.u32 %v2147_v5, %v2144_v17  ;;  %1898 = vmatmul.bf16.vlgmr.msrb.gmra.mxu0 %v1827_v21 }
 0x252   : > { %v2149_v25 = vsel %vm494_vm2, %v2140_v23, %v2148_v24  ;;  %v1994_v26 = vld [vmem:[#allocation2 + $0x18] sm:$0xf] }
 0x253   : > { %v1785_v28 = vld [vmem:[#allocation2 + $0x18] sm:$0x7]  ;;  %2218 = vmatmul.bf16.vlgmr.msrb.gmra.mxu3 %v2149_v25  ;;  %v2023_v32 = vunpack.c.l.b16 %v1994_v26 }
 0x254   : > { %v1767_v30 = vld [vmem:[#allocation2 + $0x18] sm:$0x3]  ;;  %v1812_v34 = vunpack.c.l.b16 %v1785_v28 }
 0x255   : > { %v2132_v36 = vpack.c.b16 %v2131_v18, %v2023_v32  ;;  %v1914_v37 = vunpack.c.l.b16 %v1767_v30  ;;  %v2027_v39 = vpack.c.b16 %v2024_v27, %v2023_v32 }
 0x256   : > { %v1815_v35 = vpack.c.b16 %v1812_v34, %v1812_v34 }
 0x257   : > { %v2151_v40 = vshrl.u32 %v2132_v36, 16  ;;  %v2154_v41 = vshll.u32 %v2132_v36, 16  ;;  %v1915_v29 = vpack.c.b16 %v1914_v37, %v1914_v37  ;;  %v2031_v42 = vrot.slane %v2027_v39, 3 }
 0x258   : > { %v1832_v38 = vshll.u32 %v1815_v35, 16  ;;  %v1836_v52 = vshrl.u32 %v1815_v35, 16 }
 0x259   : > { %v2153_v31 = vrot.slane %v2151_v40, 3  ;;  %v2156_v43 = vrot.slane %v2154_v41, 4  ;;  %v2032_v46 = vsel %vm1522_vm3, %v2029_v59, %v2031_v42 }
 0x25a   : > { %v1834_v45 = vrot.slane %v1832_v38, 1 }
 0x25b   : > { %1985 = vmatmul.bf16.gmra.mxu1 %v1915_v29  ;;  %v2157_v49 = vor.u32 %v2156_v43, %v2153_v31 }
 0x25c   : > { %v1835_v50 = vsel %vm358_vm1, %v1830_v47, %v1834_v45  ;;  %v1838_v53 = vor.u32 %v1836_v52, %v1834_v45 }
 0x25d   : > { %v2158_v51 = vsel %vm494_vm2, %v2148_v24, %v2157_v49 }
 0x25f   : > { %2097 = vmatmul.bf16.gmra.mxu2 %v2032_v46 }
 0x260   : > { %1903 = vmatmul.bf16.gmra.mxu0 %v1835_v50 }
 0x263   : > { %2223 = vmatmul.bf16.gmra.mxu3 %v2158_v51 }
 0x26f   : > { %2102 = vmatmul.bf16.gmra.mxu2 %v2031_v42 }
 0x270   : > { %1908 = vmatmul.bf16.gmra.mxu0 %v1838_v53 }
 0x273   : > { %2228 = vmatmul.bf16.gmra.mxu3 %v2157_v49 }
 0x2b8   : > { %v1976_v54 = vpop.f32.mrf.mxu1 }
 0x2c0   : > { %v1978_v55 = vpop.f32.mrf.mxu1 }
 0x2c8   : > { %v1981_v56 = vpop.f32.mrf.mxu1 }
 0x2cd   : > { %v1899_v57 = vpop.f32.mrf.mxu0 }
 0x2ce   : > { %v1977_v61 = vadd.f32 %v1976_v54, %v1899_v57 }
 0x2d0   : > { %v1983_v58 = vpop.f32.mrf.mxu1 }
 0x2d2   : > { %v2093_v60 = vpop.f32.mrf.mxu2 }
 0x2d3   : > { %v2107_v62 = vadd.f32 %v2093_v60, %v1977_v61 }
 0x2d5   : > { %v1901_v2 = vpop.f32.mrf.mxu0 }
 0x2d6   : > { %v2219_v4 = vpop.f32.mrf.mxu3  ;;  %v1979_v10 = vadd.f32 %v1978_v55, %v1901_v2 }
 0x2d7   : > { %v2233_v6 = vadd.f32 %v2219_v4, %v2107_v62 }
 0x2d8   : > { %v1986_v8 = vpop.f32.mrf.mxu1 }
 0x2d9   : > { %v2243_v7 = vadd.f32 %v4027_v0, %v2233_v6 }
 0x2da   : > { %v2095_v9 = vpop.f32.mrf.mxu2 }
 0x2db   : > { %v2248_v11 = vsub.f32 0.0, %v2243_v7  ;;  %v2108_v12 = vadd.f32 %v2095_v9, %v1979_v10 }
 0x2dd   : > { %v2253_v59 = vmul.f32 1.442695, %v2248_v11  ;;  %v1904_v13 = vpop.f32.mrf.mxu0 }
 0x2de   : > { %v2221_v14 = vpop.f32.mrf.mxu3  ;;  %v1982_v5 = vadd.f32 %v1981_v56, %v1904_v13 }
 0x2df   : > { %3448 = vpow2.f32 %v2253_v59  ;;  %v2234_v15 = vadd.f32 %v2221_v14, %v2108_v12 }
 0x2e0   : > { %v1988_v16 = vpop.f32.mrf.mxu1 }
 0x2e1   : > { %v2244_v3 = vadd.f32 %v4027_v0, %v2234_v15 }
 0x2e2   : > { %v2098_v17 = vpop.f32.mrf.mxu2 }
 0x2e3   : > { %v2249_v19 = vsub.f32 0.0, %v2244_v3  ;;  %v2109_v23 = vadd.f32 %v2098_v17, %v1982_v5 }
 0x2e5   : > { %v3449_v20 = vpop.eup %3448  ;;  %v2255_v21 = vmul.f32 1.442695, %v2249_v19  ;;  %v1906_v18 = vpop.f32.mrf.mxu0 }
 0x2e6   : > { %v2263_v24 = vadd.f32 1.0, %v3449_v20  ;;  %v2224_v25 = vpop.f32.mrf.mxu3  ;;  %v1984_v34 = vadd.f32 %v1983_v58, %v1906_v18 }
 0x2e7   : > { %3450 = vpow2.f32 %v2255_v21  ;;  %v2235_v26 = vadd.f32 %v2224_v25, %v2109_v23 }
 0x2e8   : > { %3452 = vrcp.f32 %v2263_v24  ;;  %v2279_v31 = vand.u32 2147483648, %v2263_v24  ;;  %v2277_v45 = vand.u32 2147483647, %v2263_v24  ;;  %vm2273_vm5 = vweird.f32 %v2263_v24 }
 0x2e9   : > { %v2245_v27 = vadd.f32 %v4027_v0, %v2235_v26 }
 0x2ea   : > { %v2100_v28 = vpop.f32.mrf.mxu2  ;;  %v2280_v52 = vor.u32 1.1754944e-38, %v2279_v31  ;;  %vm2278_vm7 = vcmp.eq.f32.partialorder %v2277_v45, 8.507059e+37 }
 0x2eb   : > { %v2250_v30 = vsub.f32 0.0, %v2245_v27  ;;  %v2110_v38 = vadd.f32 %v2100_v28, %v1984_v34 }
 0x2ed   : > { %v3451_v32 = vpop.eup %3450  ;;  %v2257_v35 = vmul.f32 1.442695, %v2250_v30  ;;  %v1909_v39 = vpop.f32.mrf.mxu0 }
 0x2ee   : > { %v3453_v36 = vpop.eup %3452  ;;  %v2264_v37 = vadd.f32 1.0, %v3451_v32  ;;  %v2226_v40 = vpop.f32.mrf.mxu3  ;;  %v1987_v54 = vadd.f32 %v1986_v8, %v1909_v39 }
 0x2ef   : > { %v2269_v41 = vmul.f32 %v3453_v36, %v2263_v24  ;;  %3454 = vpow2.f32 %v2257_v35  ;;  %v2236_v42 = vadd.f32 %v2226_v40, %v2110_v38  ;;  %vm2274_vm4 = vweird.f32 %v3453_v36 }
 0x2f0   : > { %3456 = vrcp.f32 %v2264_v37  ;;  %vm2275_vm6 = vmor %vm2273_vm5, %vm2274_vm4  ;;  %v2294_v6 = vand.u32 2147483648, %v2264_v37  ;;  %v2292_v10 = vand.u32 2147483647, %v2264_v37  ;;  %vm2288_vm9 = vweird.f32 %v2264_v37 }
 0x2f1   : > { %v2270_v29 = vsub.f32 1.0, %v2269_v41  ;;  %v2246_v46 = vadd.f32 %v4027_v0, %v2236_v42 }
 0x2f2   : > { %v2103_v43 = vpop.f32.mrf.mxu2  ;;  %v2295_v13 = vor.u32 1.1754944e-38, %v2294_v6  ;;  %vm2293_vm11 = vcmp.eq.f32.partialorder %v2292_v10, 8.507059e+37 }
 0x2f3   : > { %v2271_v44 = vmul.f32 %v3453_v36, %v2270_v29  ;;  %v2251_v50 = vsub.f32 0.0, %v2246_v46  ;;  %v2111_v62 = vadd.f32 %v2103_v43, %v1987_v54 }
 0x2f5   : > { %v3455_v47 = vpop.eup %3454  ;;  %v2272_v49 = vadd.f32 %v3453_v36, %v2271_v44  ;;  %v1911_v55 = vpop.f32.mrf.mxu0  ;;  %v2259_v60 = vmul.f32 1.442695, %v2251_v50 }
 0x2f6   : > { %v3457_v51 = vpop.eup %3456  ;;  %v2265_v53 = vadd.f32 1.0, %v3455_v47  ;;  %v2229_v56 = vpop.f32.mrf.mxu3 }
 0x2f7   : > { %v2276_v57 = vsel %vm2275_vm6, %v3453_v36, %v2272_v49  ;;  %v2284_v58 = vmul.f32 %v3457_v51, %v2264_v37  ;;  %v2237_v7 = vadd.f32 %v2229_v56, %v2111_v62  ;;  %vm2289_vm8 = vweird.f32 %v3457_v51 }
 0x2f8   : > { %v2281_v61 = vsel %vm2278_vm7, %v2280_v52, %v2276_v57  ;;  %3458 = vrcp.f32 %v2265_v53  ;;  %vm2290_vm10 = vmor %vm2288_vm9, %vm2289_vm8  ;;  %v2309_v23 = vand.u32 2147483648, %v2265_v53  ;;  %v2307_v24 = vand.u32 2147483647, %v2265_v53 }
 0x2f9   : > { %v2343_v2 = vmul.f32 %v2281_v61, %v3714_v63  ;;  %v2285_v4 = vsub.f32 1.0, %v2284_v58  ;;  %3460 = vpow2.f32 %v2259_v60  ;;  %v2247_v11 = vadd.f32 %v4027_v0, %v2237_v7 }
 0x2fa   : > { %v2105_v8 = vpop.f32.mrf.mxu2  ;;  %vm2303_vm13 = vweird.f32 %v2265_v53  ;;  %v2310_v25 = vor.u32 1.1754944e-38, %v2309_v23  ;;  %vm2308_vm15 = vcmp.eq.f32.partialorder %v2307_v24, 8.507059e+37 }
 0x2fb   : > { %2348 = vst [vmem:[%s4037_s8] sm:$0xff] %v2343_v2  ;;  %v2286_v9 = vmul.f32 %v3457_v51, %v2285_v4  ;;  %v2252_v14 = vsub.f32 0.0, %v2247_v11 }
 0x2fd   : > { %v2287_v59 = vadd.f32 %v3457_v51, %v2286_v9  ;;  %v2261_v19 = vmul.f32 1.442695, %v2252_v14 }
 0x2fe   : > { %v3459_v12 = vpop.eup %3458  ;;  %v2231_v15 = vpop.f32.mrf.mxu3 }
 0x2ff   : > { %v3461_v63 = vpop.eup %3460  ;;  %v2291_v3 = vsel %vm2290_vm10, %v3457_v51, %v2287_v59  ;;  %v2299_v16 = vmul.f32 %v3459_v12, %v2265_v53  ;;  %vm2304_vm12 = vweird.f32 %v3459_v12 }
 0x300   : > { %v2296_v17 = vsel %vm2293_vm11, %v2295_v13, %v2291_v3  ;;  %v2266_v5 = vadd.f32 1.0, %v3461_v63  ;;  %vm2305_vm14 = vmor %vm2303_vm13, %vm2304_vm12 }
 0x301   : > { %v2344_v20 = vmul.f32 %v2296_v17, %v3750_v22  ;;  %v2300_v21 = vsub.f32 1.0, %v2299_v16 }
 0x302   : > { %3462 = vrcp.f32 %v2266_v5  ;;  %v2324_v36 = vand.u32 2147483648, %v2266_v5  ;;  %v2322_v39 = vand.u32 2147483647, %v2266_v5  ;;  %vm2318_vm1 = vweird.f32 %v2266_v5 }
 0x303   : > { %2349 = vst [vmem:[%s4037_s8 + $0x8] sm:$0xff] %v2344_v20  ;;  %v2301_v0 = vmul.f32 %v3459_v12, %v2300_v21  ;;  %3464 = vpow2.f32 %v2261_v19 }
 0x304   : > { %v2325_v41 = vor.u32 1.1754944e-38, %v2324_v36  ;;  %vm2323_vm3 = vcmp.eq.f32.partialorder %v2322_v39, 8.507059e+37 }
 0x305   : > { %v2302_v18 = vadd.f32 %v3459_v12, %v2301_v0 }
 0x307   : > { %v2306_v26 = vsel %vm2305_vm14, %v3459_v12, %v2302_v18 }
 0x308   : > { %v3463_v27 = vpop.eup %3462  ;;  %v2311_v28 = vsel %vm2308_vm15, %v2310_v25, %v2306_v26 }
 0x309   : > { %v3465_v30 = vpop.eup %3464  ;;  %v2345_v22 = vmul.f32 %v2311_v28, %v3757_v33  ;;  %v2314_v32 = vmul.f32 %v3463_v27, %v2266_v5  ;;  %vm2319_vm0 = vweird.f32 %v3463_v27 }
 0x30a   : > { %v2267_v34 = vadd.f32 1.0, %v3465_v30  ;;  %vm2320_vm2 = vmor %vm2318_vm1, %vm2319_vm0 }
 0x30b   : > { %2350 = vst [vmem:[%s4037_s8 + $0x10] sm:$0xff] %v2345_v22  ;;  %v2315_v35 = vsub.f32 1.0, %v2314_v32 }
 0x30c   : > { %3466 = vrcp.f32 %v2267_v34  ;;  %v2339_v44 = vand.u32 2147483648, %v2267_v34  ;;  %v2337_v46 = vand.u32 2147483647, %v2267_v34  ;;  %vm2333_vm5 = vweird.f32 %v2267_v34 }
 0x30d   : > { %v2316_v37 = vmul.f32 %v3463_v27, %v2315_v35 }
 0x30e   : > { %v2340_v49 = vor.u32 1.1754944e-38, %v2339_v44  ;;  %vm2338_vm7 = vcmp.eq.f32.partialorder %v2337_v46, 8.507059e+37 }
 0x30f   : > { %v2317_v40 = vadd.f32 %v3463_v27, %v2316_v37 }
 0x311   : > { %v2321_v38 = vsel %vm2320_vm2, %v3463_v27, %v2317_v40 }
 0x312   : > { %v3467_v29 = vpop.eup %3466  ;;  %v2326_v42 = vsel %vm2323_vm3, %v2325_v41, %v2321_v38 }
 0x313   : > { %v2346_v33 = vmul.f32 %v2326_v42, %v3761_v48  ;;  %v2329_v31 = vmul.f32 %v3467_v29, %v2267_v34  ;;  %vm2334_vm4 = vweird.f32 %v3467_v29 }
 0x314   : > { %vm2335_vm6 = vmor %vm2333_vm5, %vm2334_vm4 }
 0x315   : > { %2351 = vst [vmem:[%s4037_s8 + $0x18] sm:$0xff] %v2346_v33  ;;  %v2330_v43 = vsub.f32 1.0, %v2329_v31 }
 0x317   : > { %v2331_v45 = vmul.f32 %v3467_v29, %v2330_v43 }
 0x319   : > { %v2332_v47 = vadd.f32 %v3467_v29, %v2331_v45 }
 0x31b   : > { %v2336_v50 = vsel %vm2335_vm6, %v3467_v29, %v2332_v47 }
 0x31c   : > { %v2341_v51 = vsel %vm2338_vm7, %v2340_v49, %v2336_v50 }
 0x31d   : > { %v2347_v52 = vmul.f32 %v2341_v51, %v3766_v1 }
 0x31f   : > { %2352 = vst [vmem:[%s4037_s8 + $0x20] sm:$0xf] %v2347_v52 }
 0x320 PF: > { %s14_s15 = sadd.s32 1, %s3480_s15  }
 0x321   : > { %p11_p4 = scmp.ge.s32.totalorder %s14_s15, 4  }
 0x323   :  { %13 = sbr.rel (!%p11_p4) target bundleno = 1 (0x1), region = 84 }

</bundles_post_ra>
